<compile_context>
chip_gen: v5e
topology: v5e:2x2
jax: 0.10.0
libtpu: 0.0.40
codegen_flags: <defaults>
</compile_context>

<pallas_src>
import functools

import jax
import jax.numpy as jnp
import numpy as np
from jax.experimental import pallas as pl
from jax.experimental.pallas import tpu as pltpu

BN_EPS = 1e-3
_PAD = 128  # lane halo (>= W+1); 128 keeps the interior lane-tile aligned


def _silu(y):
    # exp -> EUP, approximate reciprocal -> EUP: transcendentals stay off the VPU slot.
    return y * pl.reciprocal(1.0 + jnp.exp(-y), approx=True)


# ------------------------------- fused CSP kernel -------------------------------
def _csp_kernel(*refs, H, W, n):
    """Fused CSP forward for one batch element.

    Layout: channels-first planar (C, H*W) with H*W on the 128-lane axis.
    refs = [x, mask_l, mask_r,
            w1, s1, b1,
            (w9a, sa, ba, w9b, sb, bb) * n,
            w2, s2, b2,
            out]
    """
    M = H * W
    x_ref, ml_ref, mr_ref = refs[0:3]
    w1_ref, s1_ref, b1_ref = refs[3:6]
    res_refs = [refs[6 + 6 * i: 12 + 6 * i] for i in range(n)]
    w2_ref, s2_ref, b2_ref = refs[6 + 6 * n: 9 + 6 * n]
    o_ref = refs[9 + 6 * n]

    c = w1_ref.shape[0] // 2          # conv1 produces 2*c channels

    # Hoisted once per grid step: horizontal-tap validity masks (1, M).
    mask_l = ml_ref[...]              # valid when reading column w-1
    mask_r = mr_ref[...]              # valid when reading column w+1

    def conv3x3(y, w9_ref, s_ref, b_ref):
        """3x3 conv + folded BN + SiLU as ONE im2col matmul.

        y: (cin, M) value; w9_ref: (cout, 9*cin) with rows ordered
        (kh, kw) row-major, then ci — matching the patch stacking below.
        """
        cin = w9_ref.shape[1] // 9
        zpad = jnp.zeros((cin, _PAD), jnp.float32)
        ypad = jnp.concatenate([zpad, y, zpad], axis=1)      # (cin, M + 2*_PAD)
        taps = []
        for kh in range(3):
            for kw in range(3):
                # output (h, w) reads input (h + kh - 1, w + kw - 1):
                # a pure lane shift of the flat (C, H*W) slab.
                start = _PAD + (kh - 1) * W + (kw - 1)
                sh = ypad[:, start:start + M]
                if kw == 0:
                    sh = sh * mask_l                         # w-1 out of range
                elif kw == 2:
                    sh = sh * mask_r                         # w+1 out of range
                taps.append(sh)                              # h-edges hit the zero halo
        patches = jnp.concatenate(taps, axis=0)              # (9*cin, M)
        acc = jnp.dot(w9_ref[...], patches, preferred_element_type=jnp.float32)
        return _silu(acc * s_ref[...] + b_ref[...])          # (cout, M)

    # conv1: 1x1 conv + BN + SiLU, transposed so M sits on the lane axis.
    x = x_ref[0].astype(jnp.float32)                         # (in_ch, M)
    t = _silu(jnp.dot(w1_ref[...], x, preferred_element_type=jnp.float32)
              * s1_ref[...] + b1_ref[...])                   # (2c, M)

    # torch.chunk(2, dim=1): split along the channel (sublane) axis.
    ys = [t[0:c, :], t[c:2 * c, :]]
    for i in range(n):
        w9a, sa, ba, w9b, sb, bb = res_refs[i]
        h = conv3x3(ys[-1], w9a, sa, ba)
        ys.append(conv3x3(h, w9b, sb, bb) + ys[-1])          # Residual skip add

    # conv2: the channel concat is never materialized -- slice the weight per
    # chunk and accumulate partial matmuls into one (out_ch, M) accumulator.
    w2 = w2_ref[...]                                         # (out_ch, (2+n)*c)
    acc = jnp.dot(w2[:, 0:c], ys[0], preferred_element_type=jnp.float32)
    for j in range(1, len(ys)):
        acc = acc + jnp.dot(w2[:, j * c:(j + 1) * c], ys[j],
                            preferred_element_type=jnp.float32)
    out = _silu(acc * s2_ref[...] + b2_ref[...])             # (out_ch, M)
    o_ref[0] = out.astype(o_ref.dtype)


# ------------------------------------ wrapper ------------------------------------
def csp_forward(params, x_nchw):
    """CSP forward. Accepts/returns NCHW exactly like the PyTorch module."""
    B, in_ch, H, W = x_nchw.shape
    M = H * W

    w1, s1, b1 = params["conv1"]
    w2, s2, b2 = params["conv2"]
    out_ch = w2.shape[1]
    n = len(params["res_m"])

    # Horizontal-edge masks (constant-folded under jit; avoids vector int mod
    # inside the kernel).
    col = jnp.arange(M, dtype=jnp.int32) % W
    mask_l = (col >= 1).astype(jnp.float32).reshape(1, M)
    mask_r = (col <= W - 2).astype(jnp.float32).reshape(1, M)

    # NCHW -> (B, C, H*W): a free reshape; H*W lands on the 128-lane axis.
    args = [x_nchw.reshape(B, in_ch, M)]
    in_specs = [pl.BlockSpec((1, in_ch, M), lambda b: (b, 0, 0))]

    def add_small(a):  # tiny weights / masks, loaded whole each grid step
        args.append(a)
        in_specs.append(pl.BlockSpec(a.shape, lambda b: (0, 0)))

    add_small(mask_l)
    add_small(mask_r)

    add_small(w1.T)                    # (2c, in_ch)
    add_small(s1.reshape(-1, 1))
    add_small(b1.reshape(-1, 1))

    for res in params["res_m"]:
        wa, sa, ba = res["conv1"]      # HWIO (3, 3, cin, cout)
        wb, sb, bb = res["conv2"]
        ca_i, ca_o = wa.shape[2], wa.shape[3]
        cb_i, cb_o = wb.shape[2], wb.shape[3]
        # (3,3,ci,co) -> (co, kh, kw, ci) -> (co, 9*ci): matches patch stacking.
        add_small(jnp.transpose(wa, (3, 0, 1, 2)).reshape(ca_o, 9 * ca_i))
        add_small(sa.reshape(-1, 1))
        add_small(ba.reshape(-1, 1))
        add_small(jnp.transpose(wb, (3, 0, 1, 2)).reshape(cb_o, 9 * cb_i))
        add_small(sb.reshape(-1, 1))
        add_small(bb.reshape(-1, 1))

    add_small(w2.T)                    # (out_ch, (2+n)*c)
    add_small(s2.reshape(-1, 1))
    add_small(b2.reshape(-1, 1))

    kernel = functools.partial(_csp_kernel, H=H, W=W, n=n)

    # TODO(synk): at real YOLO feature-map sizes, tile H into row strips (1-row
    # halo via the index_map) sized against v7x's 64 MiB VMEM; at this demo
    # size everything fits in VMEM with huge margin on every TPU generation.
    out = pl.pallas_call(
        kernel,
        out_shape=jax.ShapeDtypeStruct((B, out_ch, M), x_nchw.dtype),
        grid=(B,),  # >= 2 parallel steps -> both v7x TensorCores get work
        in_specs=in_specs,
        out_specs=pl.BlockSpec((1, out_ch, M), lambda b: (b, 0, 0)),
        compiler_params=pltpu.CompilerParams(dimension_semantics=("parallel",)),
    )(*args)
    return out.reshape(B, out_ch, H, W)


# ------------------------------ parameter construction ------------------------------
def _make_conv_params(key, cin, cout, k):
    """Conv2d(bias=False) weight + BatchNorm folded to (scale, bias)."""
    kw, kg, kb, km, kv = jax.random.split(key, 5)
    if k == 1:
        w = 0.1 * jax.random.normal(kw, (cin, cout), jnp.float32)
    else:
        w = 0.1 * jax.random.normal(kw, (k, k, cin, cout), jnp.float32)  # HWIO
    gamma = 1.0 + 0.1 * jax.random.normal(kg, (cout,), jnp.float32)
    beta = 0.1 * jax.random.normal(kb, (cout,), jnp.float32)
    running_mean = 0.05 * jax.random.normal(km, (cout,), jnp.float32)
    running_var = 1.0 + 0.1 * jax.random.uniform(kv, (cout,), jnp.float32)
    scale = gamma / jnp.sqrt(running_var + BN_EPS)
    bias = beta - running_mean * scale
    return (w, scale, bias)


def make_csp_params(key, in_ch, out_ch, n, r):
    c = out_ch // r
    keys = jax.random.split(key, 2 + 2 * n)
    params = {
        "conv1": _make_conv_params(keys[0], in_ch, 2 * c, 1),
        "conv2": _make_conv_params(keys[1], (2 + n) * c, out_ch, 1),
        "res_m": [],
    }
    for i in range(n):
        hidden = int(c * 0.5)  # Residual default e=0.5
        params["res_m"].append({
            "conv1": _make_conv_params(keys[2 + 2 * i], c, hidden, 3),
            "conv2": _make_conv_params(keys[3 + 2 * i], hidden, c, 3),
        })
    return params


# ----------------------------- pure-JAX reference (check) -----------------------------
def _ref_conv(x, w, scale, bias, k, residual=None):
    if k == 1:
        y = jnp.einsum("bhwc,cd->bhwd", x, w)
    else:
        y = jax.lax.conv_general_dilated(
            x, w, window_strides=(1, 1), padding=((1, 1), (1, 1)),
            dimension_numbers=("NHWC", "HWIO", "NHWC"))
    y = y * scale + bias
    y = y * jax.nn.sigmoid(y)
    if residual is not None:
        y = y + residual
    return y


def csp_reference(params, x_nchw):
    x = jnp.transpose(x_nchw, (0, 2, 3, 1))
    t = _ref_conv(x, *params["conv1"], k=1)
    c = t.shape[-1] // 2
    ys = [t[..., :c], t[..., c:]]
    for res in params["res_m"]:
        h = _ref_conv(ys[-1], *res["conv1"], k=3)
        ys.append(_ref_conv(h, *res["conv2"], k=3, residual=ys[-1]))
    cat = jnp.concatenate(ys, axis=-1)
    out = _ref_conv(cat, *params["conv2"], k=1)
    return jnp.transpose(out, (0, 3, 1, 2))


if __name__ == "__main__":
    key = jax.random.PRNGKey(0)
    k_params, k_x = jax.random.split(key)

    in_ch, out_ch, n, csp, r = 4, 8, 2, False, 2  # silu_opt=0 (SiLU)
    params = make_csp_params(k_params, in_ch, out_ch, n, r)

    x = jax.random.normal(k_x, (2, in_ch, 16, 16), jnp.float32)  # NCHW like PyTorch

    out = jax.block_until_ready(jax.jit(csp_forward)(params, x))
    ref = jax.block_until_ready(csp_reference(params, x))

    assert out.shape == (2, out_ch, 16, 16)
    # Tolerance covers the approximate EUP reciprocal used for SiLU.
    np.testing.assert_allclose(np.asarray(out), np.asarray(ref), rtol=2e-2, atol=2e-2)

    print("KERNEL_OK")
</pallas_src>

<mosaic_0001>
module attributes {stable_mosaic.version = 11 : i64} {
  func.func @_csp_kernel(%arg0: i32, %arg1: memref<1x4x256xf32, #tpu.memory_space<vmem>>, %arg2: memref<1x256xf32, #tpu.memory_space<vmem>>, %arg3: memref<1x256xf32, #tpu.memory_space<vmem>>, %arg4: memref<8x4xf32, #tpu.memory_space<vmem>>, %arg5: memref<8x1xf32, #tpu.memory_space<vmem>>, %arg6: memref<8x1xf32, #tpu.memory_space<vmem>>, %arg7: memref<2x36xf32, #tpu.memory_space<vmem>>, %arg8: memref<2x1xf32, #tpu.memory_space<vmem>>, %arg9: memref<2x1xf32, #tpu.memory_space<vmem>>, %arg10: memref<4x18xf32, #tpu.memory_space<vmem>>, %arg11: memref<4x1xf32, #tpu.memory_space<vmem>>, %arg12: memref<4x1xf32, #tpu.memory_space<vmem>>, %arg13: memref<2x36xf32, #tpu.memory_space<vmem>>, %arg14: memref<2x1xf32, #tpu.memory_space<vmem>>, %arg15: memref<2x1xf32, #tpu.memory_space<vmem>>, %arg16: memref<4x18xf32, #tpu.memory_space<vmem>>, %arg17: memref<4x1xf32, #tpu.memory_space<vmem>>, %arg18: memref<4x1xf32, #tpu.memory_space<vmem>>, %arg19: memref<8x16xf32, #tpu.memory_space<vmem>>, %arg20: memref<8x1xf32, #tpu.memory_space<vmem>>, %arg21: memref<8x1xf32, #tpu.memory_space<vmem>>, %arg22: memref<1x8x256xf32, #tpu.memory_space<vmem>>) attributes {dimension_semantics = [#tpu.dimension_semantics<parallel>], iteration_bounds = array<i64: 2>, scalar_prefetch = 0 : i64, scratch_operands = 0 : i64, tpu.core_type = #tpu.core_type<tc>, window_params = [{transform_indices = @transform_0, window_bounds = array<i64: 1, 4, 256>}, {pipeline_mode = #tpu.pipeline_mode<synchronous>, transform_indices = @transform_1, window_bounds = array<i64: 1, 256>}, {pipeline_mode = #tpu.pipeline_mode<synchronous>, transform_indices = @transform_2, window_bounds = array<i64: 1, 256>}, {pipeline_mode = #tpu.pipeline_mode<synchronous>, transform_indices = @transform_3, window_bounds = array<i64: 8, 4>}, {pipeline_mode = #tpu.pipeline_mode<synchronous>, transform_indices = @transform_4, window_bounds = array<i64: 8, 1>}, {pipeline_mode = #tpu.pipeline_mode<synchronous>, transform_indices = @transform_5, window_bounds = array<i64: 8, 1>}, {pipeline_mode = #tpu.pipeline_mode<synchronous>, transform_indices = @transform_6, window_bounds = array<i64: 2, 36>}, {pipeline_mode = #tpu.pipeline_mode<synchronous>, transform_indices = @transform_7, window_bounds = array<i64: 2, 1>}, {pipeline_mode = #tpu.pipeline_mode<synchronous>, transform_indices = @transform_8, window_bounds = array<i64: 2, 1>}, {pipeline_mode = #tpu.pipeline_mode<synchronous>, transform_indices = @transform_9, window_bounds = array<i64: 4, 18>}, {pipeline_mode = #tpu.pipeline_mode<synchronous>, transform_indices = @transform_10, window_bounds = array<i64: 4, 1>}, {pipeline_mode = #tpu.pipeline_mode<synchronous>, transform_indices = @transform_11, window_bounds = array<i64: 4, 1>}, {pipeline_mode = #tpu.pipeline_mode<synchronous>, transform_indices = @transform_12, window_bounds = array<i64: 2, 36>}, {pipeline_mode = #tpu.pipeline_mode<synchronous>, transform_indices = @transform_13, window_bounds = array<i64: 2, 1>}, {pipeline_mode = #tpu.pipeline_mode<synchronous>, transform_indices = @transform_14, window_bounds = array<i64: 2, 1>}, {pipeline_mode = #tpu.pipeline_mode<synchronous>, transform_indices = @transform_15, window_bounds = array<i64: 4, 18>}, {pipeline_mode = #tpu.pipeline_mode<synchronous>, transform_indices = @transform_16, window_bounds = array<i64: 4, 1>}, {pipeline_mode = #tpu.pipeline_mode<synchronous>, transform_indices = @transform_17, window_bounds = array<i64: 4, 1>}, {pipeline_mode = #tpu.pipeline_mode<synchronous>, transform_indices = @transform_18, window_bounds = array<i64: 8, 16>}, {pipeline_mode = #tpu.pipeline_mode<synchronous>, transform_indices = @transform_19, window_bounds = array<i64: 8, 1>}, {pipeline_mode = #tpu.pipeline_mode<synchronous>, transform_indices = @transform_20, window_bounds = array<i64: 8, 1>}, {transform_indices = @transform_21, window_bounds = array<i64: 1, 8, 256>}]} {
    %c0 = arith.constant 0 : index
    %c0_0 = arith.constant 0 : index
    %0 = vector.load %arg2[%c0, %c0_0] : memref<1x256xf32, #tpu.memory_space<vmem>>, vector<1x256xf32>
    %c0_1 = arith.constant 0 : index
    %c0_2 = arith.constant 0 : index
    %1 = vector.load %arg3[%c0_1, %c0_2] : memref<1x256xf32, #tpu.memory_space<vmem>>, vector<1x256xf32>
    %c0_3 = arith.constant 0 : index
    %c0_4 = arith.constant 0 : index
    %c0_5 = arith.constant 0 : index
    %2 = vector.load %arg1[%c0_3, %c0_4, %c0_5] : memref<1x4x256xf32, #tpu.memory_space<vmem>>, vector<1x4x256xf32>
    %3 = vector.shape_cast %2 : vector<1x4x256xf32> to vector<4x256xf32>
    %c0_6 = arith.constant 0 : index
    %c0_7 = arith.constant 0 : index
    %4 = vector.load %arg4[%c0_6, %c0_7] : memref<8x4xf32, #tpu.memory_space<vmem>>, vector<8x4xf32>
    %cst = arith.constant dense<0.000000e+00> : vector<8x256xf32>
    %5 = tpu.matmul %4, %3, %cst {dimension_numbers = #tpu.dot_dimension_numbers<[1], [0], [0], [1], [0, 0, 1, 1], [], []>} : vector<8x4xf32>, vector<4x256xf32>, vector<8x256xf32> -> vector<8x256xf32>
    %c0_8 = arith.constant 0 : index
    %c0_9 = arith.constant 0 : index
    %6 = vector.load %arg5[%c0_8, %c0_9] : memref<8x1xf32, #tpu.memory_space<vmem>>, vector<8x1xf32>
    %7 = vector.broadcast %6 : vector<8x1xf32> to vector<8x256xf32>
    %8 = arith.mulf %5, %7 : vector<8x256xf32>
    %c0_10 = arith.constant 0 : index
    %c0_11 = arith.constant 0 : index
    %9 = vector.load %arg6[%c0_10, %c0_11] : memref<8x1xf32, #tpu.memory_space<vmem>>, vector<8x1xf32>
    %10 = vector.broadcast %9 : vector<8x1xf32> to vector<8x256xf32>
    %11 = arith.addf %8, %10 : vector<8x256xf32>
    %cst_12 = arith.constant 0.000000e+00 : f32
    %12 = vector.broadcast %cst_12 : f32 to vector<8x256xf32>
    %13 = arith.subf %12, %11 : vector<8x256xf32>
    %14 = math.exp %13 : vector<8x256xf32>
    %cst_13 = arith.constant 1.000000e+00 : f32
    %15 = vector.broadcast %cst_13 : f32 to vector<8x256xf32>
    %16 = arith.addf %15, %14 : vector<8x256xf32>
    %17 = tpu.reciprocal %16 {approx = true} : vector<8x256xf32> -> vector<8x256xf32>
    %18 = arith.mulf %11, %17 : vector<8x256xf32>
    %19 = vector.extract_strided_slice %18 {offsets = [0, 0], sizes = [4, 256], strides = [1, 1]} : vector<8x256xf32> to vector<4x256xf32>
    %20 = vector.extract_strided_slice %18 {offsets = [4, 0], sizes = [4, 256], strides = [1, 1]} : vector<8x256xf32> to vector<4x256xf32>
    %cst_14 = arith.constant 0.000000e+00 : f32
    %21 = vector.broadcast %cst_14 : f32 to vector<4x128xf32>
    %22 = tpu.concatenate %21, %20, %21 in 1 : vector<4x128xf32>, vector<4x256xf32>, vector<4x128xf32> -> vector<4x512xf32>
    %23 = vector.extract_strided_slice %22 {offsets = [0, 111], sizes = [4, 256], strides = [1, 1]} : vector<4x512xf32> to vector<4x256xf32>
    %24 = vector.broadcast %0 : vector<1x256xf32> to vector<4x256xf32>
    %25 = arith.mulf %23, %24 : vector<4x256xf32>
    %26 = vector.extract_strided_slice %22 {offsets = [0, 112], sizes = [4, 256], strides = [1, 1]} : vector<4x512xf32> to vector<4x256xf32>
    %27 = vector.extract_strided_slice %22 {offsets = [0, 113], sizes = [4, 256], strides = [1, 1]} : vector<4x512xf32> to vector<4x256xf32>
    %28 = vector.broadcast %1 : vector<1x256xf32> to vector<4x256xf32>
    %29 = arith.mulf %27, %28 : vector<4x256xf32>
    %30 = vector.extract_strided_slice %22 {offsets = [0, 127], sizes = [4, 256], strides = [1, 1]} : vector<4x512xf32> to vector<4x256xf32>
    %31 = vector.broadcast %0 : vector<1x256xf32> to vector<4x256xf32>
    %32 = arith.mulf %30, %31 : vector<4x256xf32>
    %33 = vector.extract_strided_slice %22 {offsets = [0, 128], sizes = [4, 256], strides = [1, 1]} : vector<4x512xf32> to vector<4x256xf32>
    %34 = vector.extract_strided_slice %22 {offsets = [0, 129], sizes = [4, 256], strides = [1, 1]} : vector<4x512xf32> to vector<4x256xf32>
    %35 = vector.broadcast %1 : vector<1x256xf32> to vector<4x256xf32>
    %36 = arith.mulf %34, %35 : vector<4x256xf32>
    %37 = vector.extract_strided_slice %22 {offsets = [0, 143], sizes = [4, 256], strides = [1, 1]} : vector<4x512xf32> to vector<4x256xf32>
    %38 = vector.broadcast %0 : vector<1x256xf32> to vector<4x256xf32>
    %39 = arith.mulf %37, %38 : vector<4x256xf32>
    %40 = vector.extract_strided_slice %22 {offsets = [0, 144], sizes = [4, 256], strides = [1, 1]} : vector<4x512xf32> to vector<4x256xf32>
    %41 = vector.extract_strided_slice %22 {offsets = [0, 145], sizes = [4, 256], strides = [1, 1]} : vector<4x512xf32> to vector<4x256xf32>
    %42 = vector.broadcast %1 : vector<1x256xf32> to vector<4x256xf32>
    %43 = arith.mulf %41, %42 : vector<4x256xf32>
    %44 = tpu.concatenate %25, %26, %29, %32, %33, %36, %39, %40, %43 in 0 : vector<4x256xf32>, vector<4x256xf32>, vector<4x256xf32>, vector<4x256xf32>, vector<4x256xf32>, vector<4x256xf32>, vector<4x256xf32>, vector<4x256xf32>, vector<4x256xf32> -> vector<36x256xf32>
    %c0_15 = arith.constant 0 : index
    %c0_16 = arith.constant 0 : index
    %45 = vector.load %arg7[%c0_15, %c0_16] : memref<2x36xf32, #tpu.memory_space<vmem>>, vector<2x36xf32>
    %cst_17 = arith.constant dense<0.000000e+00> : vector<2x256xf32>
    %46 = tpu.matmul %45, %44, %cst_17 {dimension_numbers = #tpu.dot_dimension_numbers<[1], [0], [0], [1], [0, 0, 1, 1], [], []>} : vector<2x36xf32>, vector<36x256xf32>, vector<2x256xf32> -> vector<2x256xf32>
    %c0_18 = arith.constant 0 : index
    %c0_19 = arith.constant 0 : index
    %47 = vector.load %arg8[%c0_18, %c0_19] : memref<2x1xf32, #tpu.memory_space<vmem>>, vector<2x1xf32>
    %48 = vector.broadcast %47 : vector<2x1xf32> to vector<2x256xf32>
    %49 = arith.mulf %46, %48 : vector<2x256xf32>
    %c0_20 = arith.constant 0 : index
    %c0_21 = arith.constant 0 : index
    %50 = vector.load %arg9[%c0_20, %c0_21] : memref<2x1xf32, #tpu.memory_space<vmem>>, vector<2x1xf32>
    %51 = vector.broadcast %50 : vector<2x1xf32> to vector<2x256xf32>
    %52 = arith.addf %49, %51 : vector<2x256xf32>
    %cst_22 = arith.constant 0.000000e+00 : f32
    %53 = vector.broadcast %cst_22 : f32 to vector<2x256xf32>
    %54 = arith.subf %53, %52 : vector<2x256xf32>
    %55 = math.exp %54 : vector<2x256xf32>
    %cst_23 = arith.constant 1.000000e+00 : f32
    %56 = vector.broadcast %cst_23 : f32 to vector<2x256xf32>
    %57 = arith.addf %56, %55 : vector<2x256xf32>
    %58 = tpu.reciprocal %57 {approx = true} : vector<2x256xf32> -> vector<2x256xf32>
    %59 = arith.mulf %52, %58 : vector<2x256xf32>
    %cst_24 = arith.constant 0.000000e+00 : f32
    %60 = vector.broadcast %cst_24 : f32 to vector<2x128xf32>
    %61 = tpu.concatenate %60, %59, %60 in 1 : vector<2x128xf32>, vector<2x256xf32>, vector<2x128xf32> -> vector<2x512xf32>
    %62 = vector.extract_strided_slice %61 {offsets = [0, 111], sizes = [2, 256], strides = [1, 1]} : vector<2x512xf32> to vector<2x256xf32>
    %63 = vector.broadcast %0 : vector<1x256xf32> to vector<2x256xf32>
    %64 = arith.mulf %62, %63 : vector<2x256xf32>
    %65 = vector.extract_strided_slice %61 {offsets = [0, 112], sizes = [2, 256], strides = [1, 1]} : vector<2x512xf32> to vector<2x256xf32>
    %66 = vector.extract_strided_slice %61 {offsets = [0, 113], sizes = [2, 256], strides = [1, 1]} : vector<2x512xf32> to vector<2x256xf32>
    %67 = vector.broadcast %1 : vector<1x256xf32> to vector<2x256xf32>
    %68 = arith.mulf %66, %67 : vector<2x256xf32>
    %69 = vector.extract_strided_slice %61 {offsets = [0, 127], sizes = [2, 256], strides = [1, 1]} : vector<2x512xf32> to vector<2x256xf32>
    %70 = vector.broadcast %0 : vector<1x256xf32> to vector<2x256xf32>
    %71 = arith.mulf %69, %70 : vector<2x256xf32>
    %72 = vector.extract_strided_slice %61 {offsets = [0, 128], sizes = [2, 256], strides = [1, 1]} : vector<2x512xf32> to vector<2x256xf32>
    %73 = vector.extract_strided_slice %61 {offsets = [0, 129], sizes = [2, 256], strides = [1, 1]} : vector<2x512xf32> to vector<2x256xf32>
    %74 = vector.broadcast %1 : vector<1x256xf32> to vector<2x256xf32>
    %75 = arith.mulf %73, %74 : vector<2x256xf32>
    %76 = vector.extract_strided_slice %61 {offsets = [0, 143], sizes = [2, 256], strides = [1, 1]} : vector<2x512xf32> to vector<2x256xf32>
    %77 = vector.broadcast %0 : vector<1x256xf32> to vector<2x256xf32>
    %78 = arith.mulf %76, %77 : vector<2x256xf32>
    %79 = vector.extract_strided_slice %61 {offsets = [0, 144], sizes = [2, 256], strides = [1, 1]} : vector<2x512xf32> to vector<2x256xf32>
    %80 = vector.extract_strided_slice %61 {offsets = [0, 145], sizes = [2, 256], strides = [1, 1]} : vector<2x512xf32> to vector<2x256xf32>
    %81 = vector.broadcast %1 : vector<1x256xf32> to vector<2x256xf32>
    %82 = arith.mulf %80, %81 : vector<2x256xf32>
    %83 = tpu.concatenate %64, %65, %68, %71, %72, %75, %78, %79, %82 in 0 : vector<2x256xf32>, vector<2x256xf32>, vector<2x256xf32>, vector<2x256xf32>, vector<2x256xf32>, vector<2x256xf32>, vector<2x256xf32>, vector<2x256xf32>, vector<2x256xf32> -> vector<18x256xf32>
    %c0_25 = arith.constant 0 : index
    %c0_26 = arith.constant 0 : index
    %84 = vector.load %arg10[%c0_25, %c0_26] : memref<4x18xf32, #tpu.memory_space<vmem>>, vector<4x18xf32>
    %cst_27 = arith.constant dense<0.000000e+00> : vector<4x256xf32>
    %85 = tpu.matmul %84, %83, %cst_27 {dimension_numbers = #tpu.dot_dimension_numbers<[1], [0], [0], [1], [0, 0, 1, 1], [], []>} : vector<4x18xf32>, vector<18x256xf32>, vector<4x256xf32> -> vector<4x256xf32>
    %c0_28 = arith.constant 0 : index
    %c0_29 = arith.constant 0 : index
    %86 = vector.load %arg11[%c0_28, %c0_29] : memref<4x1xf32, #tpu.memory_space<vmem>>, vector<4x1xf32>
    %87 = vector.broadcast %86 : vector<4x1xf32> to vector<4x256xf32>
    %88 = arith.mulf %85, %87 : vector<4x256xf32>
    %c0_30 = arith.constant 0 : index
    %c0_31 = arith.constant 0 : index
    %89 = vector.load %arg12[%c0_30, %c0_31] : memref<4x1xf32, #tpu.memory_space<vmem>>, vector<4x1xf32>
    %90 = vector.broadcast %89 : vector<4x1xf32> to vector<4x256xf32>
    %91 = arith.addf %88, %90 : vector<4x256xf32>
    %cst_32 = arith.constant 0.000000e+00 : f32
    %92 = vector.broadcast %cst_32 : f32 to vector<4x256xf32>
    %93 = arith.subf %92, %91 : vector<4x256xf32>
    %94 = math.exp %93 : vector<4x256xf32>
    %cst_33 = arith.constant 1.000000e+00 : f32
    %95 = vector.broadcast %cst_33 : f32 to vector<4x256xf32>
    %96 = arith.addf %95, %94 : vector<4x256xf32>
    %97 = tpu.reciprocal %96 {approx = true} : vector<4x256xf32> -> vector<4x256xf32>
    %98 = arith.mulf %91, %97 : vector<4x256xf32>
    %99 = arith.addf %98, %20 : vector<4x256xf32>
    %cst_34 = arith.constant 0.000000e+00 : f32
    %100 = vector.broadcast %cst_34 : f32 to vector<4x128xf32>
    %101 = tpu.concatenate %100, %99, %100 in 1 : vector<4x128xf32>, vector<4x256xf32>, vector<4x128xf32> -> vector<4x512xf32>
    %102 = vector.extract_strided_slice %101 {offsets = [0, 111], sizes = [4, 256], strides = [1, 1]} : vector<4x512xf32> to vector<4x256xf32>
    %103 = vector.broadcast %0 : vector<1x256xf32> to vector<4x256xf32>
    %104 = arith.mulf %102, %103 : vector<4x256xf32>
    %105 = vector.extract_strided_slice %101 {offsets = [0, 112], sizes = [4, 256], strides = [1, 1]} : vector<4x512xf32> to vector<4x256xf32>
    %106 = vector.extract_strided_slice %101 {offsets = [0, 113], sizes = [4, 256], strides = [1, 1]} : vector<4x512xf32> to vector<4x256xf32>
    %107 = vector.broadcast %1 : vector<1x256xf32> to vector<4x256xf32>
    %108 = arith.mulf %106, %107 : vector<4x256xf32>
    %109 = vector.extract_strided_slice %101 {offsets = [0, 127], sizes = [4, 256], strides = [1, 1]} : vector<4x512xf32> to vector<4x256xf32>
    %110 = vector.broadcast %0 : vector<1x256xf32> to vector<4x256xf32>
    %111 = arith.mulf %109, %110 : vector<4x256xf32>
    %112 = vector.extract_strided_slice %101 {offsets = [0, 128], sizes = [4, 256], strides = [1, 1]} : vector<4x512xf32> to vector<4x256xf32>
    %113 = vector.extract_strided_slice %101 {offsets = [0, 129], sizes = [4, 256], strides = [1, 1]} : vector<4x512xf32> to vector<4x256xf32>
    %114 = vector.broadcast %1 : vector<1x256xf32> to vector<4x256xf32>
    %115 = arith.mulf %113, %114 : vector<4x256xf32>
    %116 = vector.extract_strided_slice %101 {offsets = [0, 143], sizes = [4, 256], strides = [1, 1]} : vector<4x512xf32> to vector<4x256xf32>
    %117 = vector.broadcast %0 : vector<1x256xf32> to vector<4x256xf32>
    %118 = arith.mulf %116, %117 : vector<4x256xf32>
    %119 = vector.extract_strided_slice %101 {offsets = [0, 144], sizes = [4, 256], strides = [1, 1]} : vector<4x512xf32> to vector<4x256xf32>
    %120 = vector.extract_strided_slice %101 {offsets = [0, 145], sizes = [4, 256], strides = [1, 1]} : vector<4x512xf32> to vector<4x256xf32>
    %121 = vector.broadcast %1 : vector<1x256xf32> to vector<4x256xf32>
    %122 = arith.mulf %120, %121 : vector<4x256xf32>
    %123 = tpu.concatenate %104, %105, %108, %111, %112, %115, %118, %119, %122 in 0 : vector<4x256xf32>, vector<4x256xf32>, vector<4x256xf32>, vector<4x256xf32>, vector<4x256xf32>, vector<4x256xf32>, vector<4x256xf32>, vector<4x256xf32>, vector<4x256xf32> -> vector<36x256xf32>
    %c0_35 = arith.constant 0 : index
    %c0_36 = arith.constant 0 : index
    %124 = vector.load %arg13[%c0_35, %c0_36] : memref<2x36xf32, #tpu.memory_space<vmem>>, vector<2x36xf32>
    %cst_37 = arith.constant dense<0.000000e+00> : vector<2x256xf32>
    %125 = tpu.matmul %124, %123, %cst_37 {dimension_numbers = #tpu.dot_dimension_numbers<[1], [0], [0], [1], [0, 0, 1, 1], [], []>} : vector<2x36xf32>, vector<36x256xf32>, vector<2x256xf32> -> vector<2x256xf32>
    %c0_38 = arith.constant 0 : index
    %c0_39 = arith.constant 0 : index
    %126 = vector.load %arg14[%c0_38, %c0_39] : memref<2x1xf32, #tpu.memory_space<vmem>>, vector<2x1xf32>
    %127 = vector.broadcast %126 : vector<2x1xf32> to vector<2x256xf32>
    %128 = arith.mulf %125, %127 : vector<2x256xf32>
    %c0_40 = arith.constant 0 : index
    %c0_41 = arith.constant 0 : index
    %129 = vector.load %arg15[%c0_40, %c0_41] : memref<2x1xf32, #tpu.memory_space<vmem>>, vector<2x1xf32>
    %130 = vector.broadcast %129 : vector<2x1xf32> to vector<2x256xf32>
    %131 = arith.addf %128, %130 : vector<2x256xf32>
    %cst_42 = arith.constant 0.000000e+00 : f32
    %132 = vector.broadcast %cst_42 : f32 to vector<2x256xf32>
    %133 = arith.subf %132, %131 : vector<2x256xf32>
    %134 = math.exp %133 : vector<2x256xf32>
    %cst_43 = arith.constant 1.000000e+00 : f32
    %135 = vector.broadcast %cst_43 : f32 to vector<2x256xf32>
    %136 = arith.addf %135, %134 : vector<2x256xf32>
    %137 = tpu.reciprocal %136 {approx = true} : vector<2x256xf32> -> vector<2x256xf32>
    %138 = arith.mulf %131, %137 : vector<2x256xf32>
    %cst_44 = arith.constant 0.000000e+00 : f32
    %139 = vector.broadcast %cst_44 : f32 to vector<2x128xf32>
    %140 = tpu.concatenate %139, %138, %139 in 1 : vector<2x128xf32>, vector<2x256xf32>, vector<2x128xf32> -> vector<2x512xf32>
    %141 = vector.extract_strided_slice %140 {offsets = [0, 111], sizes = [2, 256], strides = [1, 1]} : vector<2x512xf32> to vector<2x256xf32>
    %142 = vector.broadcast %0 : vector<1x256xf32> to vector<2x256xf32>
    %143 = arith.mulf %141, %142 : vector<2x256xf32>
    %144 = vector.extract_strided_slice %140 {offsets = [0, 112], sizes = [2, 256], strides = [1, 1]} : vector<2x512xf32> to vector<2x256xf32>
    %145 = vector.extract_strided_slice %140 {offsets = [0, 113], sizes = [2, 256], strides = [1, 1]} : vector<2x512xf32> to vector<2x256xf32>
    %146 = vector.broadcast %1 : vector<1x256xf32> to vector<2x256xf32>
    %147 = arith.mulf %145, %146 : vector<2x256xf32>
    %148 = vector.extract_strided_slice %140 {offsets = [0, 127], sizes = [2, 256], strides = [1, 1]} : vector<2x512xf32> to vector<2x256xf32>
    %149 = vector.broadcast %0 : vector<1x256xf32> to vector<2x256xf32>
    %150 = arith.mulf %148, %149 : vector<2x256xf32>
    %151 = vector.extract_strided_slice %140 {offsets = [0, 128], sizes = [2, 256], strides = [1, 1]} : vector<2x512xf32> to vector<2x256xf32>
    %152 = vector.extract_strided_slice %140 {offsets = [0, 129], sizes = [2, 256], strides = [1, 1]} : vector<2x512xf32> to vector<2x256xf32>
    %153 = vector.broadcast %1 : vector<1x256xf32> to vector<2x256xf32>
    %154 = arith.mulf %152, %153 : vector<2x256xf32>
    %155 = vector.extract_strided_slice %140 {offsets = [0, 143], sizes = [2, 256], strides = [1, 1]} : vector<2x512xf32> to vector<2x256xf32>
    %156 = vector.broadcast %0 : vector<1x256xf32> to vector<2x256xf32>
    %157 = arith.mulf %155, %156 : vector<2x256xf32>
    %158 = vector.extract_strided_slice %140 {offsets = [0, 144], sizes = [2, 256], strides = [1, 1]} : vector<2x512xf32> to vector<2x256xf32>
    %159 = vector.extract_strided_slice %140 {offsets = [0, 145], sizes = [2, 256], strides = [1, 1]} : vector<2x512xf32> to vector<2x256xf32>
    %160 = vector.broadcast %1 : vector<1x256xf32> to vector<2x256xf32>
    %161 = arith.mulf %159, %160 : vector<2x256xf32>
    %162 = tpu.concatenate %143, %144, %147, %150, %151, %154, %157, %158, %161 in 0 : vector<2x256xf32>, vector<2x256xf32>, vector<2x256xf32>, vector<2x256xf32>, vector<2x256xf32>, vector<2x256xf32>, vector<2x256xf32>, vector<2x256xf32>, vector<2x256xf32> -> vector<18x256xf32>
    %c0_45 = arith.constant 0 : index
    %c0_46 = arith.constant 0 : index
    %163 = vector.load %arg16[%c0_45, %c0_46] : memref<4x18xf32, #tpu.memory_space<vmem>>, vector<4x18xf32>
    %cst_47 = arith.constant dense<0.000000e+00> : vector<4x256xf32>
    %164 = tpu.matmul %163, %162, %cst_47 {dimension_numbers = #tpu.dot_dimension_numbers<[1], [0], [0], [1], [0, 0, 1, 1], [], []>} : vector<4x18xf32>, vector<18x256xf32>, vector<4x256xf32> -> vector<4x256xf32>
    %c0_48 = arith.constant 0 : index
    %c0_49 = arith.constant 0 : index
    %165 = vector.load %arg17[%c0_48, %c0_49] : memref<4x1xf32, #tpu.memory_space<vmem>>, vector<4x1xf32>
    %166 = vector.broadcast %165 : vector<4x1xf32> to vector<4x256xf32>
    %167 = arith.mulf %164, %166 : vector<4x256xf32>
    %c0_50 = arith.constant 0 : index
    %c0_51 = arith.constant 0 : index
    %168 = vector.load %arg18[%c0_50, %c0_51] : memref<4x1xf32, #tpu.memory_space<vmem>>, vector<4x1xf32>
    %169 = vector.broadcast %168 : vector<4x1xf32> to vector<4x256xf32>
    %170 = arith.addf %167, %169 : vector<4x256xf32>
    %cst_52 = arith.constant 0.000000e+00 : f32
    %171 = vector.broadcast %cst_52 : f32 to vector<4x256xf32>
    %172 = arith.subf %171, %170 : vector<4x256xf32>
    %173 = math.exp %172 : vector<4x256xf32>
    %cst_53 = arith.constant 1.000000e+00 : f32
    %174 = vector.broadcast %cst_53 : f32 to vector<4x256xf32>
    %175 = arith.addf %174, %173 : vector<4x256xf32>
    %176 = tpu.reciprocal %175 {approx = true} : vector<4x256xf32> -> vector<4x256xf32>
    %177 = arith.mulf %170, %176 : vector<4x256xf32>
    %178 = arith.addf %177, %99 : vector<4x256xf32>
    %c0_54 = arith.constant 0 : index
    %c0_55 = arith.constant 0 : index
    %179 = vector.load %arg19[%c0_54, %c0_55] : memref<8x16xf32, #tpu.memory_space<vmem>>, vector<8x16xf32>
    %180 = vector.extract_strided_slice %179 {offsets = [0, 0], sizes = [8, 4], strides = [1, 1]} : vector<8x16xf32> to vector<8x4xf32>
    %cst_56 = arith.constant dense<0.000000e+00> : vector<8x256xf32>
    %181 = tpu.matmul %180, %19, %cst_56 {dimension_numbers = #tpu.dot_dimension_numbers<[1], [0], [0], [1], [0, 0, 1, 1], [], []>} : vector<8x4xf32>, vector<4x256xf32>, vector<8x256xf32> -> vector<8x256xf32>
    %182 = vector.extract_strided_slice %179 {offsets = [0, 4], sizes = [8, 4], strides = [1, 1]} : vector<8x16xf32> to vector<8x4xf32>
    %cst_57 = arith.constant dense<0.000000e+00> : vector<8x256xf32>
    %183 = tpu.matmul %182, %20, %cst_57 {dimension_numbers = #tpu.dot_dimension_numbers<[1], [0], [0], [1], [0, 0, 1, 1], [], []>} : vector<8x4xf32>, vector<4x256xf32>, vector<8x256xf32> -> vector<8x256xf32>
    %184 = arith.addf %181, %183 : vector<8x256xf32>
    %185 = vector.extract_strided_slice %179 {offsets = [0, 8], sizes = [8, 4], strides = [1, 1]} : vector<8x16xf32> to vector<8x4xf32>
    %cst_58 = arith.constant dense<0.000000e+00> : vector<8x256xf32>
    %186 = tpu.matmul %185, %99, %cst_58 {dimension_numbers = #tpu.dot_dimension_numbers<[1], [0], [0], [1], [0, 0, 1, 1], [], []>} : vector<8x4xf32>, vector<4x256xf32>, vector<8x256xf32> -> vector<8x256xf32>
    %187 = arith.addf %184, %186 : vector<8x256xf32>
    %188 = vector.extract_strided_slice %179 {offsets = [0, 12], sizes = [8, 4], strides = [1, 1]} : vector<8x16xf32> to vector<8x4xf32>
    %cst_59 = arith.constant dense<0.000000e+00> : vector<8x256xf32>
    %189 = tpu.matmul %188, %178, %cst_59 {dimension_numbers = #tpu.dot_dimension_numbers<[1], [0], [0], [1], [0, 0, 1, 1], [], []>} : vector<8x4xf32>, vector<4x256xf32>, vector<8x256xf32> -> vector<8x256xf32>
    %190 = arith.addf %187, %189 : vector<8x256xf32>
    %c0_60 = arith.constant 0 : index
    %c0_61 = arith.constant 0 : index
    %191 = vector.load %arg20[%c0_60, %c0_61] : memref<8x1xf32, #tpu.memory_space<vmem>>, vector<8x1xf32>
    %192 = vector.broadcast %191 : vector<8x1xf32> to vector<8x256xf32>
    %193 = arith.mulf %190, %192 : vector<8x256xf32>
    %c0_62 = arith.constant 0 : index
    %c0_63 = arith.constant 0 : index
    %194 = vector.load %arg21[%c0_62, %c0_63] : memref<8x1xf32, #tpu.memory_space<vmem>>, vector<8x1xf32>
    %195 = vector.broadcast %194 : vector<8x1xf32> to vector<8x256xf32>
    %196 = arith.addf %193, %195 : vector<8x256xf32>
    %cst_64 = arith.constant 0.000000e+00 : f32
    %197 = vector.broadcast %cst_64 : f32 to vector<8x256xf32>
    %198 = arith.subf %197, %196 : vector<8x256xf32>
    %199 = math.exp %198 : vector<8x256xf32>
    %cst_65 = arith.constant 1.000000e+00 : f32
    %200 = vector.broadcast %cst_65 : f32 to vector<8x256xf32>
    %201 = arith.addf %200, %199 : vector<8x256xf32>
    %202 = tpu.reciprocal %201 {approx = true} : vector<8x256xf32> -> vector<8x256xf32>
    %203 = arith.mulf %196, %202 : vector<8x256xf32>
    %c0_66 = arith.constant 0 : index
    %c0_67 = arith.constant 0 : index
    %c0_68 = arith.constant 0 : index
    %204 = vector.load %arg22[%c0_66, %c0_67, %c0_68] : memref<1x8x256xf32, #tpu.memory_space<vmem>>, vector<1x8x256xf32>
    %205 = vector.shape_cast %204 : vector<1x8x256xf32> to vector<8x256xf32>
    %206 = vector.shape_cast %203 : vector<8x256xf32> to vector<1x8x256xf32>
    tpu.vector_store %arg22[%c0_66, %c0_67, %c0_68], %206 {strides = array<i32>} : memref<1x8x256xf32, #tpu.memory_space<vmem>>, vector<1x8x256xf32>,
    return
  }
  func.func @transform_0(%arg0: i32) -> (i32, i32, i32) {
    %c0_i32 = arith.constant 0 : i32
    %c0_i32_0 = arith.constant 0 : i32
    %c0_i32_1 = arith.constant 0 : i32
    return %arg0, %c0_i32, %c0_i32_0 : i32, i32, i32
  }
  func.func @transform_1(%arg0: i32) -> (i32, i32) {
    %c0_i32 = arith.constant 0 : i32
    %c0_i32_0 = arith.constant 0 : i32
    %c0_i32_1 = arith.constant 0 : i32
    return %c0_i32, %c0_i32_0 : i32, i32
  }
  func.func @transform_2(%arg0: i32) -> (i32, i32) {
    %c0_i32 = arith.constant 0 : i32
    %c0_i32_0 = arith.constant 0 : i32
    %c0_i32_1 = arith.constant 0 : i32
    return %c0_i32, %c0_i32_0 : i32, i32
  }
  func.func @transform_3(%arg0: i32) -> (i32, i32) {
    %c0_i32 = arith.constant 0 : i32
    %c0_i32_0 = arith.constant 0 : i32
    %c0_i32_1 = arith.constant 0 : i32
    return %c0_i32, %c0_i32_0 : i32, i32
  }
  func.func @transform_4(%arg0: i32) -> (i32, i32) {
    %c0_i32 = arith.constant 0 : i32
    %c0_i32_0 = arith.constant 0 : i32
    %c0_i32_1 = arith.constant 0 : i32
    return %c0_i32, %c0_i32_0 : i32, i32
  }
  func.func @transform_5(%arg0: i32) -> (i32, i32) {
    %c0_i32 = arith.constant 0 : i32
    %c0_i32_0 = arith.constant 0 : i32
    %c0_i32_1 = arith.constant 0 : i32
    return %c0_i32, %c0_i32_0 : i32, i32
  }
  func.func @transform_6(%arg0: i32) -> (i32, i32) {
    %c0_i32 = arith.constant 0 : i32
    %c0_i32_0 = arith.constant 0 : i32
    %c0_i32_1 = arith.constant 0 : i32
    return %c0_i32, %c0_i32_0 : i32, i32
  }
  func.func @transform_7(%arg0: i32) -> (i32, i32) {
    %c0_i32 = arith.constant 0 : i32
    %c0_i32_0 = arith.constant 0 : i32
    %c0_i32_1 = arith.constant 0 : i32
    return %c0_i32, %c0_i32_0 : i32, i32
  }
  func.func @transform_8(%arg0: i32) -> (i32, i32) {
    %c0_i32 = arith.constant 0 : i32
    %c0_i32_0 = arith.constant 0 : i32
    %c0_i32_1 = arith.constant 0 : i32
    return %c0_i32, %c0_i32_0 : i32, i32
  }
  func.func @transform_9(%arg0: i32) -> (i32, i32) {
    %c0_i32 = arith.constant 0 : i32
    %c0_i32_0 = arith.constant 0 : i32
    %c0_i32_1 = arith.constant 0 : i32
    return %c0_i32, %c0_i32_0 : i32, i32
  }
  func.func @transform_10(%arg0: i32) -> (i32, i32) {
    %c0_i32 = arith.constant 0 : i32
    %c0_i32_0 = arith.constant 0 : i32
    %c0_i32_1 = arith.constant 0 : i32
    return %c0_i32, %c0_i32_0 : i32, i32
  }
  func.func @transform_11(%arg0: i32) -> (i32, i32) {
    %c0_i32 = arith.constant 0 : i32
    %c0_i32_0 = arith.constant 0 : i32
    %c0_i32_1 = arith.constant 0 : i32
    return %c0_i32, %c0_i32_0 : i32, i32
  }
  func.func @transform_12(%arg0: i32) -> (i32, i32) {
    %c0_i32 = arith.constant 0 : i32
    %c0_i32_0 = arith.constant 0 : i32
    %c0_i32_1 = arith.constant 0 : i32
    return %c0_i32, %c0_i32_0 : i32, i32
  }
  func.func @transform_13(%arg0: i32) -> (i32, i32) {
    %c0_i32 = arith.constant 0 : i32
    %c0_i32_0 = arith.constant 0 : i32
    %c0_i32_1 = arith.constant 0 : i32
    return %c0_i32, %c0_i32_0 : i32, i32
  }
  func.func @transform_14(%arg0: i32) -> (i32, i32) {
    %c0_i32 = arith.constant 0 : i32
    %c0_i32_0 = arith.constant 0 : i32
    %c0_i32_1 = arith.constant 0 : i32
    return %c0_i32, %c0_i32_0 : i32, i32
  }
  func.func @transform_15(%arg0: i32) -> (i32, i32) {
    %c0_i32 = arith.constant 0 : i32
    %c0_i32_0 = arith.constant 0 : i32
    %c0_i32_1 = arith.constant 0 : i32
    return %c0_i32, %c0_i32_0 : i32, i32
  }
  func.func @transform_16(%arg0: i32) -> (i32, i32) {
    %c0_i32 = arith.constant 0 : i32
    %c0_i32_0 = arith.constant 0 : i32
    %c0_i32_1 = arith.constant 0 : i32
    return %c0_i32, %c0_i32_0 : i32, i32
  }
  func.func @transform_17(%arg0: i32) -> (i32, i32) {
    %c0_i32 = arith.constant 0 : i32
    %c0_i32_0 = arith.constant 0 : i32
    %c0_i32_1 = arith.constant 0 : i32
    return %c0_i32, %c0_i32_0 : i32, i32
  }
  func.func @transform_18(%arg0: i32) -> (i32, i32) {
    %c0_i32 = arith.constant 0 : i32
    %c0_i32_0 = arith.constant 0 : i32
    %c0_i32_1 = arith.constant 0 : i32
    return %c0_i32, %c0_i32_0 : i32, i32
  }
  func.func @transform_19(%arg0: i32) -> (i32, i32) {
    %c0_i32 = arith.constant 0 : i32
    %c0_i32_0 = arith.constant 0 : i32
    %c0_i32_1 = arith.constant 0 : i32
    return %c0_i32, %c0_i32_0 : i32, i32
  }
  func.func @transform_20(%arg0: i32) -> (i32, i32) {
    %c0_i32 = arith.constant 0 : i32
    %c0_i32_0 = arith.constant 0 : i32
    %c0_i32_1 = arith.constant 0 : i32
    return %c0_i32, %c0_i32_0 : i32, i32
  }
  func.func @transform_21(%arg0: i32) -> (i32, i32, i32) {
    %c0_i32 = arith.constant 0 : i32
    %c0_i32_0 = arith.constant 0 : i32
    %c0_i32_1 = arith.constant 0 : i32
    return %arg0, %c0_i32, %c0_i32_0 : i32, i32, i32
  }
}

</mosaic_0001>

<bundles_post_ra>
// kernel: csp_forward.1
= control target key start
LH: loop header
LB: loop body
LE: loop exit
PB: predicated region body
PF: predicated region fallthrough
CT: control target
= control target key end

     0   :  { %s3238_s0 = inlined_call_operand.vmem [shape: f32[2,4,256], index: 0, kind: input, shape index: {}]   ;;  %s3239_s1 = inlined_call_operand.vmem [shape: f32[1,256], index: 1, kind: input, shape index: {}]   ;;  %s3240_s2 = inlined_call_operand.vmem [shape: f32[1,256], index: 2, kind: input, shape index: {}]   ;;  %s3241_s3 = inlined_call_operand.vmem [shape: f32[8,4], index: 3, kind: input, shape index: {}]   ;;  %s3242_s4 = inlined_call_operand.vmem [shape: f32[8,1], index: 4, kind: input, shape index: {}]   ;;  %s3243_s5 = inlined_call_operand.vmem [shape: f32[8,1], index: 5, kind: input, shape index: {}]   ;;  %s3244_s6 = inlined_call_operand.vmem [shape: f32[2,36], index: 6, kind: input, shape index: {}]   ;;  %s3245_s7 = inlined_call_operand.vmem [shape: f32[2,1], index: 7, kind: input, shape index: {}]   ;;  %s3246_s8 = inlined_call_operand.vmem [shape: f32[2,1], index: 8, kind: input, shape index: {}]   ;;  %s3247_s9 = inlined_call_operand.vmem [shape: f32[4,18], index: 9, kind: input, shape index: {}]   ;;  %s3248_s10 = inlined_call_operand.vmem [shape: f32[4,1], index: 10, kind: input, shape index: {}]   ;;  %s3249_s11 = inlined_call_operand.vmem [shape: f32[4,1], index: 11, kind: input, shape index: {}]   ;;  %s3250_s12 = inlined_call_operand.vmem [shape: f32[2,36], index: 12, kind: input, shape index: {}]   ;;  %s3251_s13 = inlined_call_operand.vmem [shape: f32[2,1], index: 13, kind: input, shape index: {}]   ;;  %s3252_s14 = inlined_call_operand.vmem [shape: f32[2,1], index: 14, kind: input, shape index: {}]   ;;  %s3253_s15 = inlined_call_operand.vmem [shape: f32[4,18], index: 15, kind: input, shape index: {}]   ;;  %s3254_s16 = inlined_call_operand.vmem [shape: f32[4,1], index: 16, kind: input, shape index: {}]   ;;  %s3255_s17 = inlined_call_operand.vmem [shape: f32[4,1], index: 17, kind: input, shape index: {}]   ;;  %s3256_s18 = inlined_call_operand.vmem [shape: f32[8,16], index: 18, kind: input, shape index: {}]   ;;  %s3257_s19 = inlined_call_operand.vmem [shape: f32[8,1], index: 19, kind: input, shape index: {}]   ;;  %s3258_s20 = inlined_call_operand.vmem [shape: f32[8,1], index: 20, kind: input, shape index: {}]   ;;  %s3259_s21 = inlined_call_operand.vmem [shape: f32[2,8,256], index: 21, kind: output, shape index: {}]  }
   0x1   :  { %3261 = sst [smem:[#allocation3_spill]] %s3238_s0 }
   0x2   :  { %3262 = sst [smem:[#allocation4_spill]] %s3239_s1 }
   0x3   :  { %3263 = sst [smem:[#allocation5_spill]] %s3240_s2  ;;  %s2596_s2 = smov 0  }
   0x4   :  { %3264 = sst [smem:[#allocation6_spill]] %s3241_s3 }
   0x5   :  { %3265 = sst [smem:[#allocation7_spill]] %s3242_s4 }
   0x6   :  { %3266 = sst [smem:[#allocation8_spill]] %s3243_s5 }
   0x7   :  { %3267 = sst [smem:[#allocation9_spill]] %s3259_s21 }
   0x8 LB: > { %3268 = sst [smem:[#allocation2_spill]] %s2467_s2  ;;  %s2106_s25 = sadd.s32 4294967295, %s2467_s2   ;;  %s2467_s2 = sphi %s2596_s2, %s31_s2  }
   0x9   : > { %p2110_p0 = scmp.ge.s32.totalorder %s2467_s2, 1  ;;  %p587_p1 = scmp.lt.s32.totalorder %s2467_s2, 3 }
   0xb   : > { %p588_p2 = pnand %p2110_p0, %p587_p1 }
   0xc   : > { %s3269_s3 = sld [smem:[#allocation7_spill]] (!%p588_p2)  ;;  %p647_p3 = scmp.lt.s32.totalorder (!%p588_p2), %s2106_s25, 1 }
   0xd   : > { %591 = sbr.rel (%p588_p2) target bundleno = 2020 (0x7e4), region = 104  ;;  %s3270_s0 = sld [smem:[#allocation5_spill]] (!%p588_p2) }
   0xe   : > { %s2470_s30 = smov (!%p588_p2), 17   ;;  %s2471_s5 = smov (!%p588_p2), 1  }
   0xf   : > { %s3271_s1 = sld [smem:[#allocation3_spill]] (!%p588_p2)  ;;  %s2474_s21 = smov (!%p588_p2), 113  }
  0x10   : > { %s3274_s22 = sld [smem:[#allocation6_spill]] (!%p588_p2)  ;;  %s2475_s2 = smov (!%p588_p2), 111  }
  0x11   : > { %s2477_s23 = smov (!%p588_p2), 95   ;;  %s2480_s26 = smov (!%p588_p2), 96  }
  0x12   : > { %v714_v0 = vld [vmem:[%s3269_s3] sm:$0xff]  ;;  %v2469_v1 = vmov 0   ;;  %s3278_s25 = smov (!%p647_p3, %s2106_s25), 1  ;;  %s3272_s3 = sld [smem:[#allocation8_spill]]  ;;  %vm669_vm0 = vcmask 1043456   ;;  %vm665_vm1 = vcmask 31744  }
  0x13   : > { %2180 = vset.pattern.permute.xlu0 %v2469_v1  ;;  %v658_v2 = vld [vmem:[%s3270_s0] sm:$0x3]  ;;  %2246 = vset.pattern.permute.xlu1 %v2469_v1  ;;  %s2153_s4 = sshll.u32 %s3278_s25, 3  ;;  %s3273_s0 = sld [smem:[#allocation4_spill]]  ;;  %v2476_v15 = vmov 0.0   ;;  %vm794_vm2 = vcmask 7168  }
  0x14   : > { %717 = vperm.xlu0 %2180, %v714_v0   ;;  %v764_v3 = vperm.slane %v658_v2, 0  ;;  %2297 = vset.pattern.permute.xlu2 %v2469_v1  ;;  %v765_v6 = vperm.slane %v658_v2, 1  ;;  %v2640_v16 = vrot.slane %v2476_v15, 4  ;;  %vm806_vm3 = vcmask 121856   ;;  %s2481_s27 = smov 126   ;;  %s2484_s29 = smov 120  }
  0x15   : > { %s651_s24 = scalar_lea.vmem %s3271_s1, %s2153_s4  ;;  %s2472_s4 = smov 15   ;;  %vm818_vm4 = vcmask 138240   ;;  %vm782_vm5 = vcmask 1039360   ;;  %vm770_vm6 = vcmask 924672   ;;  %vm921_vm7 = vcmask 777216  }
  0x16   : > { %814 = vrot.lane.b32.xlu1 %v764_v3, %s2470_s30  ;;  %790 = vrot.lane.b32.xlu2 %v764_v3, %s2471_s5  ;;  %v659_v4 = vld [vmem:[%s651_s24] sm:$0xff]  ;;  %s2478_s1 = smov 94   ;;  %s2479_s24 = smov 110   ;;  %vm936_vm8 = vcmask 769024   ;;  %vm755_vm9 = vcmask 908288   ;;  %vm894_vm10 = vcmask 900096  }
  0x17   : > { %662 = vst [vmem:[#allocation1] ss:$2 sm:$0xff] %v659_v4  ;;  %v660_v8 = vld [vmem:[%s3274_s22] sm:$0xff]  ;;  %vm909_vm11 = vcmask 785408   ;;  %vm850_vm12 = vcmask 1031168   ;;  %vm868_vm13 = vcmask 916480  }
  0x18   : > { %v722_v5 = vld [vmem:[%s3272_s3] sm:$0xff]  ;;  %s2482_s3 = smov 112   ;;  %vm1012_vm14 = vcmask 293888   ;;  %vm1210_vm15 = vcmask 1041408  }
  0x19   : > { %v657_v7 = vld [vmem:[%s3273_s0] sm:$0x3] }
  0x1a   : > { %v749_v9 = vperm.slane %v657_v7, 0  ;;  %v750_v12 = vperm.slane %v657_v7, 1 }
  0x1c   : > { %725 = vperm.xlu0 %2180, %v722_v5  }
  0x1e   : > { %816 = vrot.lane.b32.xlu1 %v765_v6, %s2470_s30  ;;  %792 = vrot.lane.b32.xlu2 %v765_v6, %s2471_s5  ;;  %v663_v10 = vld.sshfl [vmem:[#allocation1] sm:$0xff pattern:$0x75316420]  ;;  %v664_v11 = vld.sshfl [vmem:[#allocation1 + $0x8] sm:$0xff pattern:$0x75316420] }
  0x1f   : > { %2115 = vmatpush.msk.msra.mxu0 %vm669_vm0, %v663_v10  ;;  %2117 = vmatpush.msk.msra.mxu1 %vm669_vm0, %v664_v11  ;;  %s2473_s5 = smov 127  }
  0x20   : > { %2116 = vmatmul.msk.f32.vlgmr.msra.gmra.mxu0 %vm665_vm1, %v660_v8  ;;  %2118 = vmatmul.msk.f32.vlgmr.msra.gmra.mxu1 %vm665_vm1, %v660_v8 }
  0x24   : > { %802 = vrot.lane.b32.xlu0 %v749_v9, %s2472_s4 }
  0x26   : > { %804 = vrot.lane.b32.xlu1 %v750_v12, %s2472_s4  ;;  %778 = vrot.lane.b32.xlu2 %v749_v9, %s2473_s5 }
  0x2c   : > { %780 = vrot.lane.b32.xlu0 %v750_v12, %s2473_s5 }
  0x2e   : > { %766 = vrot.lane.b32.xlu1 %v764_v3, %s2474_s21  ;;  %768 = vrot.lane.b32.xlu2 %v765_v6, %s2474_s21 }
  0x34   : > { %919 = vrot.lane.b32.xlu0 %v2640_v16, %s2477_s23 }
  0x36   : > { %751 = vrot.lane.b32.xlu1 %v749_v9, %s2475_s2  ;;  %753 = vrot.lane.b32.xlu2 %v750_v12, %s2475_s2 }
  0x70   : > { %v2635_v13 = vpop.permute.xlu2 %790 }
  0x78   : > { %v793_v17 = vpop.permute.xlu2 %792 }
  0x79   : > { %v2644_v18 = vmul.f32 0.0, %v793_v17  ;;  %v2672_v52 = vsel %vm794_vm2, %v2635_v13, %v793_v17  ;;  %vm1217_vm2 = vcmask 1045504  }
  0x7b   : > { %v887_v20 = vrot.slane %v2644_v18, 4 }
  0x7d   : > { %892 = vrot.lane.b32.xlu0 %v887_v20, %s2479_s24 }
  0x80   : > { %v779_v46 = vpop.permute.xlu2 %778 }
  0x81   : > { %v2706_v5 = vmul.f32 0.0, %v779_v46 }
  0x83   : > { %v859_v10 = vrot.slane %v2706_v5, 4 }
  0x86   : > { %v718_v22 = vpop.permute.xlu0 %717 }
  0x88   : > { %v2637_v14 = vpop.permute.xlu1 %814  ;;  %v2694_v0 = vpop.permute.xlu2 %768 }
  0x8e   : > { %v726_v29 = vpop.permute.xlu0 %725 }
  0x90   : > { %v817_v19 = vpop.permute.xlu1 %816 }
  0x91   : > { %v825_v21 = vmul.f32 0.0, %v817_v19  ;;  %v2692_v62 = vsel %vm818_vm4, %v2637_v14, %v817_v19 }
  0x93   : > { %934 = vrot.lane.b32.xlu2 %v825_v21, %s2478_s1 }
  0x96   : > { %v2653_v41 = vpop.permute.xlu0 %802 }
  0x98   : > { %v805_v23 = vpop.permute.xlu1 %804 }
  0x99   : > { %v2649_v24 = vmul.f32 0.0, %v805_v23  ;;  %v2678_v54 = vsel %vm806_vm3, %v2653_v41, %v805_v23  ;;  %v2729_v23 = vpop.permute.xlu2 %753  ;;  %vm1265_vm3 = vcmask 146432  }
  0x9b   : > { %907 = vrot.lane.b32.xlu1 %v2649_v24, %s2480_s26 }
  0x9d   : > { %v691_v25 = vpop.f32.mrf.mxu0  ;;  %v711_v26 = vpop.f32.mrf.mxu1 }
  0x9e   : > { %v720_v27 = vmul.f32 %v718_v22, %v691_v25  ;;  %v721_v28 = vmul.f32 %v718_v22, %v711_v26  ;;  %v2687_v59 = vpop.permute.xlu0 %780 }
  0x9f   : > { %v2698_v1 = vsel %vm782_vm5, %v779_v46, %v2687_v59 }
  0xa0   : > { %v728_v30 = vadd.f32 %v726_v29, %v720_v27  ;;  %v729_v31 = vadd.f32 %v726_v29, %v721_v28  ;;  %v767_v63 = vpop.permute.xlu1 %766 }
  0xa1   : > { %v2701_v3 = vsel %vm770_vm6, %v767_v63, %v2694_v0  ;;  %v2711_v8 = vmul.f32 0.0, %v767_v63 }
  0xa2   : > { %v730_v32 = vsub.f32 0.0, %v728_v30  ;;  %v731_v33 = vsub.f32 0.0, %v729_v31 }
  0xa4   : > { %v732_v34 = vmul.f32 1.442695, %v730_v32  ;;  %v734_v35 = vmul.f32 1.442695, %v731_v33 }
  0xa6   : > { %2413 = vpow2.f32 %v732_v34  ;;  %v2731_v25 = vpop.permute.xlu0 %919 }
  0xa7   : > { %2415 = vpow2.f32 %v734_v35 }
  0xa8   : > { %v2733_v26 = vpop.permute.xlu1 %751 }
  0xac   : > { %v2414_v36 = vpop.eup %2413 }
  0xad   : > { %v2416_v37 = vpop.eup %2415  ;;  %v736_v38 = vadd.f32 1.0, %v2414_v36 }
  0xae   : > { %v737_v39 = vadd.f32 1.0, %v2416_v37 }
  0xaf   : > { %2417 = vrcp.f32 %v736_v38 }
  0xb0   : > { %2419 = vrcp.f32 %v737_v39 }
  0xb5   : > { %v2418_v40 = vpop.eup %2417 }
  0xb6   : > { %v2420_v42 = vpop.eup %2419  ;;  %v2655_v43 = vmul.f32 %v2418_v40, %v728_v30 }
  0xb7   : > { %v2657_v44 = vmul.f32 %v2420_v42, %v729_v31 }
  0xb8   : > { %v2660_v45 = vrot.slane %v2655_v43, 4 }
  0xb9   : > { %v2663_v47 = vrot.slane %v2657_v44, 4 }
  0xba   : > { %v823_v48 = vmul.f32 %v2637_v14, %v2660_v45  ;;  %v828_v49 = vrot.slane %v2660_v45, 4  ;;  %v799_v56 = vmul.f32 %v2635_v13, %v2660_v45  ;;  %v811_v57 = vmul.f32 %v2653_v41, %v2660_v45 }
  0xbb   : > { %v2181_v50 = vpack.i.bf16 %v2663_v47, %v2660_v45  ;;  %v829_v51 = vrot.slane %v2663_v47, 4  ;;  %v800_v53 = vmul.f32 %v2672_v52, %v2663_v47  ;;  %v812_v58 = vmul.f32 %v2678_v54, %v2663_v47 }
  0xbc   : > { %930 = vrot.lane.b32.xlu0 %v823_v48, %s2478_s1  ;;  %v885_v60 = vrot.slane %v799_v56, 4  ;;  %v824_v4 = vmul.f32 %v2692_v62, %v2663_v47  ;;  %v788_v7 = vmul.f32 %v2698_v1, %v2660_v45  ;;  %v776_v9 = vmul.f32 %v2701_v3, %v2660_v45 }
  0xbd   : > { %2182 = vrot.lane.b32.xlu1 %v2181_v50, %s2475_s2  ;;  %v2191_v55 = vpack.i.bf16 %v829_v51, %v828_v49  ;;  %v886_v61 = vrot.slane %v800_v53, 4  ;;  %v2186_v2 = vpack.i.bf16 %v812_v58, %v811_v57  ;;  %v777_v17 = vmul.f32 %v2694_v0, %v2663_v47 }
  0xbe   : > { %v860_v11 = vrot.slane %v788_v7, 4  ;;  %v2196_v12 = vpack.i.bf16 %v776_v9, %v2711_v8  ;;  %v789_v20 = vmul.f32 %v2687_v59, %v2663_v47  ;;  %v2211_v22 = vpack.i.bf16 %v828_v49, %v2640_v16 }
  0xbf   : > { %2192 = vrot.lane.b32.xlu2 %v2191_v55, %s2477_s23  ;;  %v2201_v6 = vpack.i.bf16 %v886_v61, %v885_v60 }
  0xc0   : > { %v2206_v19 = vpack.i.bf16 %v860_v11, %v859_v10  ;;  %v861_v21 = vrot.slane %v789_v20, 4 }
  0xc4   : > { %2187 = vrot.lane.b32.xlu0 %v2186_v2, %s2480_s26 }
  0xc5   : > { %932 = vrot.lane.b32.xlu1 %v824_v4, %s2478_s1 }
  0xc7   : > { %2202 = vrot.lane.b32.xlu2 %v2201_v6, %s2479_s24 }
  0xcc   : > { %2197 = vrot.lane.b32.xlu0 %v2196_v12, %s2481_s27 }
  0xcd   : > { %848 = vrot.lane.b32.xlu1 %v777_v17, %s2481_s27 }
  0xcf   : > { %2207 = vrot.lane.b32.xlu2 %v2206_v19, %s2482_s3 }
  0xd4   : > { %866 = vrot.lane.b32.xlu0 %v861_v21, %s2482_s3 }
  0xd5   : > { %2212 = vrot.lane.b32.xlu1 %v2211_v22, %s2473_s5 }
  0xd7   : > { %834 = vrot.lane.b32.xlu2 %v829_v51, %s2473_s5 }
  0xed   : > { %v2735_v27 = vpop.permute.xlu2 %934 }
  0xef   : > { %v2739_v29 = vpop.permute.xlu0 %892 }
 0x10d   : > { %v2737_v28 = vpop.permute.xlu1 %907 }
 0x119   : > { %v2193_v30 = vpop.permute.xlu2 %2192 }
 0x11a   : > { %v2195_v32 = vunpack.i.h.bf16 %v2193_v30  ;;  %v2194_v33 = vunpack.i.l.bf16 %v2193_v30 }
 0x11c   : > { %v922_v48 = vsel %vm921_vm7, %v2194_v33, %v2195_v32  ;;  %v923_v58 = vsel %vm921_vm7, %v2195_v32, %v2731_v25 }
 0x121   : > { %v2203_v34 = vpop.permute.xlu2 %2202 }
 0x122   : > { %v2205_v38 = vunpack.i.h.bf16 %v2203_v34  ;;  %v2204_v39 = vunpack.i.l.bf16 %v2203_v34 }
 0x124   : > { %v895_v60 = vsel %vm894_vm10, %v2204_v39, %v2205_v38  ;;  %v896_v61 = vsel %vm894_vm10, %v2205_v38, %v2739_v29 }
 0x129   : > { %v2763_v7 = vpop.permute.xlu2 %2207 }
 0x12a   : > { %v2210_v21 = vunpack.i.h.bf16 %v2763_v7  ;;  %v2209_v22 = vunpack.i.l.bf16 %v2763_v7 }
 0x12c   : > { %v869_v32 = vsel %vm868_vm13, %v2209_v22, %v2210_v21 }
 0x12e   : > { %v931_v16 = vpop.permute.xlu0 %930 }
 0x12f   : > { %v2183_v31 = vpop.permute.xlu1 %2182  ;;  %988 = vrot.lane.b32.xlu0 %v931_v16, %s2470_s30 }
 0x130   : > { %v2185_v35 = vunpack.i.h.bf16 %v2183_v31  ;;  %v2184_v36 = vunpack.i.l.bf16 %v2183_v31 }
 0x132   : > { %v878_v49 = vsel %vm755_vm9, %v2184_v36, %v2185_v35  ;;  %v947_v6 = vsel %vm669_vm0, %v2185_v35, %v896_v61  ;;  %v945_v10 = vsel %vm669_vm0, %v2184_v36, %v2204_v39  ;;  %v835_v36 = vpop.permute.xlu2 %834  ;;  %v1068_v61 = vld [vmem:[%s3246_s8] sm:$0x3] }
 0x133   : > { %v946_v4 = vsel %vm669_vm0, %v878_v49, %v895_v60  ;;  %v1060_v60 = vld [vmem:[%s3245_s7] sm:$0x3] }
 0x134   : > { %v2226_v17 = vpack.i.bf16 %v947_v6, %v946_v4 }
 0x136   : > { %v2188_v37 = vpop.permute.xlu0 %2187 }
 0x137   : > { %v933_v40 = vpop.permute.xlu1 %932  ;;  %v2190_v42 = vunpack.i.h.bf16 %v2188_v37  ;;  %v2189_v46 = vunpack.i.l.bf16 %v2188_v37 }
 0x138   : > { %v937_v50 = vsel %vm936_vm8, %v931_v16, %v933_v40  ;;  %v938_v51 = vsel %vm936_vm8, %v933_v40, %v2735_v27  ;;  %v2780_v16 = vsel %vm755_vm9, %v2733_v26, %v2729_v23 }
 0x139   : > { %v911_v53 = vsel %vm909_vm11, %v2190_v42, %v2737_v28  ;;  %v910_v55 = vsel %vm909_vm11, %v2189_v46, %v2190_v42  ;;  %990 = vrot.lane.b32.xlu1 %v937_v50, %s2470_s30  ;;  %992 = vrot.lane.b32.xlu2 %v938_v51, %s2470_s30  ;;  %v948_v56 = vsel %vm669_vm0, %v2189_v46, %v2194_v33  ;;  %v2794_v42 = vmul.f32 0.0, %v2733_v26 }
 0x13a   : > { %v949_v57 = vsel %vm669_vm0, %v910_v55, %v922_v48  ;;  %v950_v2 = vsel %vm669_vm0, %v911_v53, %v923_v58  ;;  %v762_v46 = vmul.f32 %v2729_v23, %v2663_v47  ;;  %v761_v49 = vmul.f32 %v2780_v16, %v2660_v45 }
 0x13b   : > { %v2216_v63 = vpack.i.bf16 %v949_v57, %v948_v56  ;;  %v2221_v12 = vpack.i.bf16 %v945_v10, %v950_v2  ;;  %v1160_v2 = vrot.slane %v2644_v18, 6 }
 0x13c   : > { %v941_v53 = vsel %vm669_vm0, %v762_v46, %v835_v36 }
 0x13d   : > { %2217 = vrot.lane.b32.xlu0 %v2216_v63, %s2470_s30  ;;  %v1176_v63 = vrot.slane %v2649_v24, 4 }
 0x13e   : > { %v2765_v9 = vpop.permute.xlu0 %2197 }
 0x13f   : > { %v849_v11 = vpop.permute.xlu1 %848  ;;  %v2200_v19 = vunpack.i.h.bf16 %v2765_v9  ;;  %v2199_v20 = vunpack.i.l.bf16 %v2765_v9 }
 0x141   : > { %2222 = vrot.lane.b32.xlu1 %v2221_v12, %s2470_s30  ;;  %2227 = vrot.lane.b32.xlu2 %v2226_v17, %s2470_s30  ;;  %v851_v30 = vsel %vm850_vm12, %v2199_v20, %v2200_v19  ;;  %v852_v34 = vsel %vm850_vm12, %v2200_v19, %v849_v11 }
 0x142   : > { %v942_v40 = vsel %vm669_vm0, %v851_v30, %v869_v32 }
 0x146   : > { %v867_v31 = vpop.permute.xlu0 %866 }
 0x147   : > { %v2785_v33 = vpop.permute.xlu1 %2212  ;;  %v870_v35 = vsel %vm868_vm13, %v2210_v21, %v867_v31  ;;  %v944_v26 = vsel %vm669_vm0, %v849_v11, %v867_v31 }
 0x148   : > { %v2215_v37 = vunpack.i.h.bf16 %v2785_v33  ;;  %v2214_v38 = vunpack.i.l.bf16 %v2785_v33  ;;  %v943_v39 = vsel %vm669_vm0, %v852_v34, %v870_v35  ;;  %v1561_v33 = vld [vmem:[%s3251_s13] sm:$0x3] }
 0x149   : > { %v2231_v48 = vpack.i.bf16 %v943_v39, %v942_v40 }
 0x14a   : > { %v837_v50 = vsel %vm782_vm5, %v2215_v37, %v835_v36  ;;  %v836_v51 = vsel %vm782_vm5, %v2214_v38, %v2215_v37 }
 0x14b   : > { %v939_v55 = vsel %vm669_vm0, %v2794_v42, %v836_v51  ;;  %2232 = vrot.lane.b32.xlu0 %v2231_v48, %s2470_s30  ;;  %v940_v56 = vsel %vm669_vm0, %v761_v49, %v837_v50 }
 0x14c   : > { %v2236_v57 = vpack.i.bf16 %v939_v55, %v944_v26  ;;  %v2241_v58 = vpack.i.bf16 %v941_v53, %v940_v56 }
 0x14e   : > { %2237 = vrot.lane.b32.xlu1 %v2236_v57, %s2470_s30  ;;  %2242 = vrot.lane.b32.xlu2 %v2241_v58, %s2470_s30  ;;  %v951_v57 = vld [vmem:[%s3244_s6] sm:$0x3] }
 0x153   : > { %1063 = vperm.xlu0 %2180, %v1060_v60  }
 0x156   : > { %1071 = vperm.xlu1 %2246, %v1068_v61  }
 0x15b   : > { %1181 = vrot.lane.b32.xlu0 %v1176_v63, %s2480_s26  ;;  %v1190_v63 = vrot.slane %v2476_v15, 2 }
 0x15e   : > { %1165 = vrot.lane.b32.xlu1 %v1160_v2, %s2479_s24 }
 0x163   : > { %1195 = vrot.lane.b32.xlu0 %v1190_v63, %s2477_s23 }
 0x193   : > { %v993_v4 = vpop.permute.xlu2 %992 }
 0x19b   : > { %v2228_v21 = vpop.permute.xlu2 %2227 }
 0x19c   : > { %v2230_v31 = vunpack.i.h.bf16 %v2228_v21  ;;  %v2229_v32 = vunpack.i.l.bf16 %v2228_v21 }
 0x19e   : > { %v999_v39 = vsel %vm818_vm4, %v2229_v32, %v2230_v31 }
 0x1a1   : > { %v989_v6 = vpop.permute.xlu0 %988 }
 0x1a8   : > { %v2243_v46 = vpop.permute.xlu2 %2242 }
 0x1a9   : > { %v2245_v53 = vunpack.i.h.bf16 %v2243_v46  ;;  %v2244_v55 = vunpack.i.l.bf16 %v2243_v46 }
 0x1ab   : > { %v991_v10 = vpop.permute.xlu1 %990  ;;  %v995_v61 = vsel %vm818_vm4, %v2244_v55, %v2245_v53 }
 0x1ac   : > { %v1002_v11 = vsel %vm818_vm4, %v989_v6, %v991_v10  ;;  %v1003_v12 = vsel %vm818_vm4, %v991_v10, %v993_v4 }
 0x1ad   : > { %2119 = vmatpush.msk.msra.mxu2 %vm669_vm0, %v1002_v11  ;;  %2121 = vmatpush.msk.msra.mxu3 %vm669_vm0, %v1003_v12 }
 0x1af   : > { %v2218_v17 = vpop.permute.xlu0 %2217 }
 0x1b0   : > { %v2220_v19 = vunpack.i.h.bf16 %v2218_v17  ;;  %v2219_v24 = vunpack.i.l.bf16 %v2218_v17 }
 0x1b2   : > { %v1000_v30 = vsel %vm818_vm4, %v2219_v24, %v2220_v19 }
 0x1b3   : > { %v2223_v18 = vpop.permute.xlu1 %2222  ;;  %1032 = vmatpush.msra.mxu2 %v1000_v30 }
 0x1b4   : > { %v2225_v34 = vunpack.i.h.bf16 %v2223_v18  ;;  %v2224_v35 = vunpack.i.l.bf16 %v2223_v18 }
 0x1b6   : > { %v998_v36 = vsel %vm818_vm4, %v2225_v34, %v2229_v32  ;;  %v1001_v37 = vsel %vm818_vm4, %v2220_v19, %v2224_v35 }
 0x1b7   : > { %1033 = vmatpush.msra.mxu2 %v998_v36  ;;  %1052 = vmatpush.msra.mxu3 %v1001_v37 }
 0x1b9   : > { %1053 = vmatpush.msra.mxu3 %v999_v39  ;;  %v1102_v39 = vrot.slane %v2476_v15, 6 }
 0x1bd   : > { %v2233_v40 = vpop.permute.xlu0 %2232 }
 0x1be   : > { %v2235_v48 = vunpack.i.h.bf16 %v2233_v40  ;;  %v2234_v49 = vunpack.i.l.bf16 %v2233_v40 }
 0x1c0   : > { %v2238_v50 = vpop.permute.xlu1 %2237  ;;  %v996_v51 = vsel %vm818_vm4, %v2234_v49, %v2235_v48 }
 0x1c1   : > { %v2240_v26 = vunpack.i.h.bf16 %v2238_v50  ;;  %v2239_v56 = vunpack.i.l.bf16 %v2238_v50  ;;  %1034 = vmatpush.msra.mxu2 %v996_v51 }
 0x1c3   : > { %v994_v58 = vsel %vm818_vm4, %v2240_v26, %v2244_v55  ;;  %v997_v60 = vsel %vm818_vm4, %v2235_v48, %v2239_v56 }
 0x1c4   : > { %1035 = vmatpush.msra.mxu2 %v994_v58  ;;  %1054 = vmatpush.msra.mxu3 %v997_v60 }
 0x1c5   : > { %2120 = vmatmul.msk.f32.vlgmr.msra.gmra.mxu2 %vm1012_vm14, %v951_v57  ;;  %v1064_v2 = vpop.permute.xlu0 %1063 }
 0x1c6   : > { %1055 = vmatpush.msra.mxu3 %v995_v61 }
 0x1c7   : > { %2122 = vmatmul.msk.f32.vlgmr.msra.gmra.mxu3 %vm1012_vm14, %v951_v57 }
 0x1c8   : > { %v1072_v10 = vpop.permute.xlu1 %1071 }
 0x248   : > { %v1037_v4 = vpop.f32.mrf.mxu2 }
 0x249   : > { %v1066_v6 = vmul.f32 %v1064_v2, %v1037_v4 }
 0x24a   : > { %v1057_v11 = vpop.f32.mrf.mxu3 }
 0x24b   : > { %v1074_v12 = vadd.f32 %v1072_v10, %v1066_v6  ;;  %v1067_v17 = vmul.f32 %v1064_v2, %v1057_v11  ;;  %v1118_v2 = vrot.slane %v2711_v8, 4 }
 0x24d   : > { %v1076_v19 = vsub.f32 0.0, %v1074_v12  ;;  %v1075_v24 = vadd.f32 %v1072_v10, %v1067_v17  ;;  %v1134_v10 = vrot.slane %v2706_v5, 2 }
 0x24f   : > { %v1078_v21 = vmul.f32 1.442695, %v1076_v19  ;;  %v1077_v30 = vsub.f32 0.0, %v1075_v24 }
 0x251   : > { %2421 = vpow2.f32 %v1078_v21  ;;  %v1080_v18 = vmul.f32 1.442695, %v1077_v30 }
 0x253   : > { %2423 = vpow2.f32 %v1080_v18 }
 0x257   : > { %v2422_v31 = vpop.eup %2421 }
 0x258   : > { %v1082_v32 = vadd.f32 1.0, %v2422_v31 }
 0x259   : > { %v2424_v34 = vpop.eup %2423 }
 0x25a   : > { %2425 = vrcp.f32 %v1082_v32  ;;  %v1083_v35 = vadd.f32 1.0, %v2424_v34 }
 0x25c   : > { %2427 = vrcp.f32 %v1083_v35 }
 0x260   : > { %v2426_v36 = vpop.eup %2425 }
 0x261   : > { %v2841_v37 = vmul.f32 %v2426_v36, %v1074_v12  ;;  %v2886_v36 = vpop.permute.xlu0 %1181 }
 0x262   : > { %v2428_v40 = vpop.eup %2427 }
 0x263   : > { %v2844_v46 = vmul.f32 %v2428_v40, %v1075_v24  ;;  %v1098_v48 = vmul.f32 %v2841_v37, %v2637_v14  ;;  %v1103_v49 = vrot.slane %v2841_v37, 6  ;;  %v1094_v15 = vmul.f32 %v2841_v37, %v2635_v13 }
 0x264   : > { %v1090_v57 = vmul.f32 %v2841_v37, %v2701_v3  ;;  %v1092_v61 = vmul.f32 %v2841_v37, %v2698_v1  ;;  %v1188_v12 = vrot.slane %v2841_v37, 2  ;;  %v1096_v5 = vmul.f32 %v2841_v37, %v2653_v41 }
 0x265   : > { %1204 = vrot.lane.b32.xlu1 %v1098_v48, %s2478_s1  ;;  %v2247_v50 = vpack.i.bf16 %v2844_v46, %v2841_v37  ;;  %v2252_v51 = vpack.i.bf16 %v1103_v49, %v1102_v39  ;;  %v1095_v53 = vmul.f32 %v2844_v46, %v2672_v52  ;;  %v1104_v26 = vrot.slane %v2844_v46, 6  ;;  %v2891_v48 = vpop.permute.xlu1 %1165 }
 0x266   : > { %v1158_v56 = vrot.slane %v1094_v15, 6  ;;  %v1099_v58 = vmul.f32 %v2844_v46, %v2692_v62  ;;  %v1119_v63 = vrot.slane %v1090_v57, 4  ;;  %v1189_v4 = vrot.slane %v2844_v46, 2 }
 0x267   : > { %2248 = vrot.lane.b32.xlu2 %v2247_v50, %s2475_s2  ;;  %2253 = vrot.lane.b32.xlu0 %v2252_v51, %s2473_s5  ;;  %v1159_v55 = vrot.slane %v1095_v53, 6  ;;  %v1135_v6 = vrot.slane %v1092_v61, 2  ;;  %v1097_v24 = vmul.f32 %v2844_v46, %v2678_v54  ;;  %v1093_v8 = vmul.f32 %v2844_v46, %v2687_v59 }
 0x268   : > { %v2272_v11 = vpack.i.bf16 %v1119_v63, %v1118_v2  ;;  %v2257_v17 = vpack.i.bf16 %v1189_v4, %v1188_v12  ;;  %v1174_v18 = vrot.slane %v1096_v5, 4  ;;  %v1091_v32 = vmul.f32 %v2844_v46, %v2694_v0 }
 0x269   : > { %v2262_v60 = vpack.i.bf16 %v1159_v55, %v1158_v56  ;;  %v2277_v19 = vpack.i.bf16 %v1135_v6, %v1134_v10  ;;  %v1175_v21 = vrot.slane %v1097_v24, 4  ;;  %v1136_v30 = vrot.slane %v1093_v8, 2  ;;  %v2893_v49 = vpop.permute.xlu0 %1195 }
 0x26a   : > { %v1120_v34 = vrot.slane %v1091_v32, 4 }
 0x26b   : > { %v2267_v31 = vpack.i.bf16 %v1175_v21, %v1174_v18 }
 0x26d   : > { %1109 = vrot.lane.b32.xlu1 %v1104_v26, %s2473_s5 }
 0x26f   : > { %1206 = vrot.lane.b32.xlu2 %v1099_v58, %s2478_s1  ;;  %2263 = vrot.lane.b32.xlu0 %v2262_v60, %s2479_s24 }
 0x275   : > { %2273 = vrot.lane.b32.xlu1 %v2272_v11, %s2481_s27 }
 0x277   : > { %2258 = vrot.lane.b32.xlu2 %v2257_v17, %s2477_s23  ;;  %2278 = vrot.lane.b32.xlu0 %v2277_v19, %s2482_s3 }
 0x27d   : > { %1141 = vrot.lane.b32.xlu1 %v1136_v30, %s2482_s3 }
 0x27f   : > { %2268 = vrot.lane.b32.xlu2 %v2267_v31, %s2480_s26 }
 0x287   : > { %1125 = vrot.lane.b32.xlu2 %v1120_v34, %s2481_s27 }
 0x2c1   : > { %v2249_v35 = vpop.permute.xlu2 %2248 }
 0x2c2   : > { %v2251_v56 = vunpack.i.h.bf16 %v2249_v35  ;;  %v2250_v57 = vunpack.i.l.bf16 %v2249_v35 }
 0x2c4   : > { %v1152_v12 = vsel %vm755_vm9, %v2250_v57, %v2251_v56 }
 0x2c9   : > { %v1207_v39 = vpop.permute.xlu2 %1206 }
 0x2ca   : > { %v1209_v40 = vsel %vm936_vm8, %v1207_v39, %v2735_v27 }
 0x2cb   : > { %1253 = vrot.lane.b32.xlu1 %v1209_v40, %s2470_s30 }
 0x2d1   : > { %v2259_v50 = vpop.permute.xlu2 %2258 }
 0x2d2   : > { %v2261_v58 = vunpack.i.h.bf16 %v2259_v50  ;;  %v2260_v60 = vunpack.i.l.bf16 %v2259_v50 }
 0x2d4   : > { %v1197_v30 = vsel %vm921_vm7, %v2260_v60, %v2261_v58 }
 0x2d7   : > { %v1205_v51 = vpop.permute.xlu1 %1204 }
 0x2d8   : > { %1249 = vrot.lane.b32.xlu2 %v1205_v51, %s2470_s30  ;;  %v1208_v53 = vsel %vm936_vm8, %v1205_v51, %v1207_v39 }
 0x2d9   : > { %v2897_v15 = vpop.permute.xlu0 %2253  ;;  %1251 = vrot.lane.b32.xlu0 %v1208_v53, %s2470_s30  ;;  %v2269_v55 = vpop.permute.xlu2 %2268 }
 0x2da   : > { %v2271_v61 = vunpack.i.h.bf16 %v2269_v55  ;;  %v2270_v63 = vunpack.i.l.bf16 %v2269_v55  ;;  %v2256_v4 = vunpack.i.h.bf16 %v2897_v15  ;;  %v2255_v6 = vunpack.i.l.bf16 %v2897_v15 }
 0x2dc   : > { %v1183_v8 = vsel %vm909_vm11, %v2270_v63, %v2271_v61  ;;  %v1111_v18 = vsel %vm782_vm5, %v2255_v6, %v2256_v4  ;;  %v1184_v55 = vsel %vm909_vm11, %v2271_v61, %v2886_v36  ;;  %v1198_v61 = vsel %vm921_vm7, %v2261_v58, %v2893_v49 }
 0x2dd   : > { %v1211_v53 = vsel %vm1210_vm15, %v2794_v42, %v1111_v18 }
 0x2df   : > { %v1110_v26 = vpop.permute.xlu1 %1109 }
 0x2e1   : > { %v2264_v2 = vpop.permute.xlu0 %2263 }
 0x2e2   : > { %v2266_v10 = vunpack.i.h.bf16 %v2264_v2  ;;  %v2265_v11 = vunpack.i.l.bf16 %v2264_v2 }
 0x2e4   : > { %v1168_v17 = vsel %vm894_vm10, %v2266_v10, %v2891_v48  ;;  %v1167_v19 = vsel %vm894_vm10, %v2265_v11, %v2266_v10  ;;  %v1221_v24 = vsel %vm1210_vm15, %v2250_v57, %v2265_v11  ;;  %v1089_v57 = vmul.f32 %v2844_v46, %v2729_v23 }
 0x2e5   : > { %v1222_v5 = vsel %vm1210_vm15, %v1152_v12, %v1167_v19  ;;  %v1224_v21 = vsel %vm669_vm0, %v1221_v24, %v2270_v63  ;;  %v1223_v34 = vsel %vm1210_vm15, %v2251_v56, %v1168_v17  ;;  %v1112_v46 = vsel %vm782_vm5, %v2256_v4, %v1110_v26  ;;  %v1126_v17 = vpop.permute.xlu2 %1125 }
 0x2e6   : > { %v1225_v31 = vsel %vm669_vm0, %v1222_v5, %v1183_v8  ;;  %v1227_v32 = vsel %vm1217_vm2, %v1224_v21, %v2260_v60  ;;  %v1226_v10 = vsel %vm669_vm0, %v1223_v34, %v1184_v55  ;;  %v1213_v12 = vsel %vm1210_vm15, %v1089_v57, %v1110_v26 }
 0x2e7   : > { %v2917_v35 = vpop.permute.xlu1 %2273  ;;  %v1228_v39 = vsel %vm1217_vm2, %v1225_v31, %v1197_v30  ;;  %v1088_v24 = vmul.f32 %v2841_v37, %v2780_v16  ;;  %v1229_v21 = vsel %vm1217_vm2, %v1226_v10, %v1198_v61  ;;  %v1216_v4 = vsel %vm669_vm0, %v1213_v12, %v1126_v17 }
 0x2e8   : > { %v2276_v40 = vunpack.i.h.bf16 %v2917_v35  ;;  %v2275_v50 = vunpack.i.l.bf16 %v2917_v35  ;;  %v2282_v51 = vpack.i.bf16 %v1228_v39, %v1227_v32  ;;  %v1321_v39 = vld [vmem:[%s3249_s11] sm:$0xf] }
 0x2e9   : > { %v2928_v60 = vpop.permute.xlu0 %2278  ;;  %v1212_v58 = vsel %vm1210_vm15, %v1088_v24, %v1112_v46 }
 0x2ea   : > { %v1127_v56 = vsel %vm850_vm12, %v2275_v50, %v2276_v40  ;;  %v2281_v63 = vunpack.i.h.bf16 %v2928_v60  ;;  %v2280_v2 = vunpack.i.l.bf16 %v2928_v60  ;;  %2283 = vrot.lane.b32.xlu2 %v2282_v51, %s2470_s30  ;;  %v1128_v8 = vsel %vm850_vm12, %v2276_v40, %v1126_v17 }
 0x2eb   : > { %v1214_v11 = vsel %vm669_vm0, %v1211_v53, %v1127_v56  ;;  %v1215_v31 = vsel %vm669_vm0, %v1212_v58, %v1128_v8 }
 0x2ec   : > { %v1143_v19 = vsel %vm868_vm13, %v2280_v2, %v2281_v63 }
 0x2ed   : > { %v1218_v5 = vsel %vm1217_vm2, %v1214_v11, %v1143_v19 }
 0x2ee   : > { %v2287_v30 = vpack.i.bf16 %v1218_v5, %v1229_v21  ;;  %v1230_v21 = vld [vmem:[%s3247_s9] sm:$0xf] }
 0x2ef   : > { %v1142_v26 = vpop.permute.xlu1 %1141 }
 0x2f0   : > { %v1144_v18 = vsel %vm868_vm13, %v2281_v63, %v1142_v26  ;;  %v1220_v32 = vsel %vm1217_vm2, %v1216_v4, %v1142_v26  ;;  %2288 = vrot.lane.b32.xlu0 %v2287_v30, %s2470_s30  ;;  %v1313_v63 = vld [vmem:[%s3248_s10] sm:$0xf] }
 0x2f1   : > { %v1219_v37 = vsel %vm1217_vm2, %v1215_v31, %v1144_v18 }
 0x2f2   : > { %v2292_v34 = vpack.i.bf16 %v1220_v32, %v1219_v37  ;;  %1316 = vperm.xlu2 %2297, %v1313_v63  }
 0x2f4   : > { %2293 = vrot.lane.b32.xlu1 %v2292_v34, %s2470_s30 }
 0x2f8   : > { %1324 = vperm.xlu0 %2180, %v1321_v39  }
 0x332   : > { %v1250_v40 = vpop.permute.xlu2 %1249 }
 0x33d   : > { %v1254_v57 = vpop.permute.xlu1 %1253 }
 0x344   : > { %v2284_v51 = vpop.permute.xlu2 %2283 }
 0x345   : > { %v2286_v53 = vunpack.i.h.bf16 %v2284_v51  ;;  %v2285_v55 = vunpack.i.l.bf16 %v2284_v51 }
 0x347   : > { %v1257_v61 = vsel %vm818_vm4, %v2285_v55, %v2286_v53 }
 0x34b   : > { %v1252_v56 = vpop.permute.xlu0 %1251 }
 0x34c   : > { %v1259_v10 = vsel %vm818_vm4, %v1250_v40, %v1252_v56  ;;  %v1260_v11 = vsel %vm818_vm4, %v1252_v56, %v1254_v57  ;;  %v1317_v4 = vpop.permute.xlu2 %1316 }
 0x34d   : > { %2123 = vmatpush.msk.msrb.mxu0 %vm1210_vm15, %v1259_v10  ;;  %2125 = vmatpush.msk.msrb.mxu1 %vm1210_vm15, %v1260_v11 }
 0x34f   : > { %1287 = vmatpush.msrb.mxu0 %v1257_v61 }
 0x362   : > { %v2289_v46 = vpop.permute.xlu0 %2288 }
 0x363   : > { %v2290_v12 = vunpack.i.l.bf16 %v2289_v46  ;;  %v2291_v24 = vunpack.i.h.bf16 %v2289_v46 }
 0x365   : > { %v1258_v17 = vsel %vm818_vm4, %v2286_v53, %v2290_v12 }
 0x366   : > { %1307 = vmatpush.msrb.mxu1 %v1258_v17  ;;  %v2294_v19 = vpop.permute.xlu1 %2293 }
 0x367   : > { %v2296_v8 = vunpack.i.h.bf16 %v2294_v19  ;;  %v2295_v5 = vunpack.i.l.bf16 %v2294_v19 }
 0x369   : > { %v1255_v30 = vsel %vm818_vm4, %v2291_v24, %v2295_v5  ;;  %v1256_v58 = vsel %vm818_vm4, %v2295_v5, %v2296_v8 }
 0x36a   : > { %1288 = vmatpush.msrb.mxu0 %v1255_v30  ;;  %1308 = vmatpush.msrb.mxu1 %v1256_v58  ;;  %v1325_v37 = vpop.permute.xlu0 %1324 }
 0x36b   : > { %2124 = vmatmul.msk.f32.vlgmr.msrb.gmra.mxu0 %vm1265_vm3, %v1230_v21  ;;  %2126 = vmatmul.msk.f32.vlgmr.msrb.gmra.mxu1 %vm1265_vm3, %v1230_v21 }
 0x3e8   : > { %v1290_v26 = vpop.f32.mrf.mxu0  ;;  %v1310_v18 = vpop.f32.mrf.mxu1 }
 0x3e9   : > { %v1319_v31 = vmul.f32 %v1317_v4, %v1290_v26  ;;  %v1320_v32 = vmul.f32 %v1317_v4, %v1310_v18 }
 0x3eb   : > { %v1327_v34 = vadd.f32 %v1325_v37, %v1319_v31  ;;  %v1328_v39 = vadd.f32 %v1325_v37, %v1320_v32 }
 0x3ed   : > { %v1329_v40 = vsub.f32 0.0, %v1327_v34  ;;  %v1330_v51 = vsub.f32 0.0, %v1328_v39 }
 0x3ef   : > { %v1331_v53 = vmul.f32 1.442695, %v1329_v40  ;;  %v1333_v55 = vmul.f32 1.442695, %v1330_v51 }
 0x3f1   : > { %2429 = vpow2.f32 %v1331_v53 }
 0x3f2   : > { %2431 = vpow2.f32 %v1333_v55 }
 0x3f7   : > { %v2430_v57 = vpop.eup %2429 }
 0x3f8   : > { %v2432_v56 = vpop.eup %2431  ;;  %v1335_v63 = vadd.f32 1.0, %v2430_v57 }
 0x3f9   : > { %v1336_v10 = vadd.f32 1.0, %v2432_v56 }
 0x3fa   : > { %2433 = vrcp.f32 %v1335_v63 }
 0x3fb   : > { %2435 = vrcp.f32 %v1336_v10 }
 0x400   : > { %v2434_v11 = vpop.eup %2433 }
 0x401   : > { %v2436_v61 = vpop.eup %2435  ;;  %v1339_v46 = vmul.f32 %v2434_v11, %v1327_v34 }
 0x402   : > { %v1340_v12 = vmul.f32 %v2436_v61, %v1328_v39 }
 0x403   : > { %v2978_v17 = vadd.f32 %v1339_v46, %v2660_v45 }
 0x404   : > { %v2981_v19 = vadd.f32 %v1340_v12, %v2663_v47 }
 0x405   : > { %v1353_v24 = vmul.f32 %v2978_v17, %v2637_v14  ;;  %v1351_v8 = vmul.f32 %v2978_v17, %v2653_v41  ;;  %v1349_v58 = vmul.f32 %v2978_v17, %v2635_v13  ;;  %v1357_v26 = vrot.slane %v2978_v17, 4 }
 0x406   : > { %v2298_v5 = vpack.i.bf16 %v2981_v19, %v2978_v17  ;;  %v1352_v21 = vmul.f32 %v2981_v19, %v2678_v54  ;;  %v1350_v4 = vmul.f32 %v2981_v19, %v2672_v52  ;;  %v1358_v18 = vrot.slane %v2981_v19, 4 }
 0x407   : > { %1435 = vrot.lane.b32.xlu1 %v1353_v24, %s2478_s1  ;;  %v1402_v31 = vrot.slane %v1349_v58, 4  ;;  %v1354_v34 = vmul.f32 %v2981_v19, %v2692_v62  ;;  %v1347_v39 = vmul.f32 %v2978_v17, %v2698_v1  ;;  %v1348_v40 = vmul.f32 %v2981_v19, %v2687_v59 }
 0x408   : > { %2299 = vrot.lane.b32.xlu2 %v2298_v5, %s2475_s2  ;;  %v2303_v30 = vpack.i.bf16 %v1352_v21, %v1351_v8  ;;  %v1403_v32 = vrot.slane %v1350_v4, 4  ;;  %v2308_v37 = vpack.i.bf16 %v1358_v18, %v1357_v26  ;;  %v1345_v53 = vmul.f32 %v2978_v17, %v2701_v3 }
 0x409   : > { %v1346_v55 = vmul.f32 %v2981_v19, %v2694_v0  ;;  %v1381_v57 = vrot.slane %v1347_v39, 4  ;;  %v1382_v56 = vrot.slane %v1348_v40, 4  ;;  %v1343_v7 = vmul.f32 %v2978_v17, %v2780_v16 }
 0x40a   : > { %2304 = vrot.lane.b32.xlu0 %v2303_v30, %s2480_s26  ;;  %v2318_v51 = vpack.i.bf16 %v1403_v32, %v1402_v31 }
 0x40b   : > { %v2313_v63 = vpack.i.bf16 %v1346_v55, %v1345_v53  ;;  %v2323_v10 = vpack.i.bf16 %v1382_v56, %v1381_v57 }
 0x40f   : > { %2309 = vrot.lane.b32.xlu1 %v2308_v37, %s2477_s23 }
 0x410   : > { %1437 = vrot.lane.b32.xlu2 %v1354_v34, %s2478_s1 }
 0x412   : > { %2319 = vrot.lane.b32.xlu0 %v2318_v51, %s2479_s24 }
 0x417   : > { %2314 = vrot.lane.b32.xlu1 %v2313_v63, %s2481_s27 }
 0x418   : > { %2324 = vrot.lane.b32.xlu2 %v2323_v10, %s2482_s3 }
 0x41a   : > { %2329 = vrot.lane.b32.xlu0 %v2308_v37, %s2473_s5 }
 0x462   : > { %v2300_v11 = vpop.permute.xlu2 %2299 }
 0x463   : > { %v2302_v58 = vunpack.i.h.bf16 %v2300_v11  ;;  %v2301_v4 = vunpack.i.l.bf16 %v2300_v11 }
 0x465   : > { %v1396_v63 = vsel %vm755_vm9, %v2301_v4, %v2302_v58 }
 0x46a   : > { %v1438_v61 = vpop.permute.xlu2 %1437 }
 0x46b   : > { %v1440_v46 = vsel %vm936_vm8, %v1438_v61, %v2735_v27 }
 0x46c   : > { %1494 = vrot.lane.b32.xlu0 %v1440_v46, %s2470_s30 }
 0x472   : > { %v2325_v32 = vpop.permute.xlu2 %2324 }
 0x473   : > { %v2327_v10 = vunpack.i.h.bf16 %v2325_v32  ;;  %v2326_v46 = vunpack.i.l.bf16 %v2325_v32 }
 0x479   : > { %v1436_v12 = vpop.permute.xlu1 %1435 }
 0x47a   : > { %1490 = vrot.lane.b32.xlu1 %v1436_v12, %s2470_s30  ;;  %v1439_v24 = vsel %vm936_vm8, %v1436_v12, %v1438_v61 }
 0x47b   : > { %1492 = vrot.lane.b32.xlu2 %v1439_v24, %s2470_s30 }
 0x47c   : > { %v2305_v8 = vpop.permute.xlu0 %2304 }
 0x47d   : > { %v2307_v5 = vunpack.i.h.bf16 %v2305_v8  ;;  %v2306_v21 = vunpack.i.l.bf16 %v2305_v8 }
 0x47f   : > { %v1420_v31 = vsel %vm909_vm11, %v2307_v5, %v2737_v28  ;;  %v1419_v37 = vsel %vm909_vm11, %v2306_v21, %v2307_v5 }
 0x481   : > { %v2310_v30 = vpop.permute.xlu1 %2309 }
 0x482   : > { %v2312_v26 = vunpack.i.h.bf16 %v2310_v30  ;;  %v2311_v18 = vunpack.i.l.bf16 %v2310_v30 }
 0x484   : > { %v1429_v34 = vsel %vm921_vm7, %v2312_v26, %v2731_v25  ;;  %v1428_v39 = vsel %vm921_vm7, %v2311_v18, %v2312_v26  ;;  %v2320_v40 = vpop.permute.xlu0 %2319  ;;  %v1450_v51 = vsel %vm669_vm0, %v2306_v21, %v2311_v18  ;;  %v1388_v18 = vsel %vm868_vm13, %v2326_v46, %v2327_v10 }
 0x485   : > { %v2322_v53 = vunpack.i.h.bf16 %v2320_v40  ;;  %v2321_v55 = vunpack.i.l.bf16 %v2320_v40  ;;  %v1451_v57 = vsel %vm669_vm0, %v1419_v37, %v1428_v39  ;;  %v1452_v56 = vsel %vm669_vm0, %v1420_v31, %v1429_v34 }
 0x486   : > { %v2333_v28 = vpack.i.bf16 %v1451_v57, %v1450_v51 }
 0x487   : > { %v1409_v11 = vsel %vm894_vm10, %v2322_v53, %v2739_v29  ;;  %v1408_v25 = vsel %vm894_vm10, %v2321_v55, %v2322_v53  ;;  %v1447_v61 = vsel %vm669_vm0, %v2301_v4, %v2321_v55  ;;  %v1344_v29 = vmul.f32 %v2981_v19, %v2729_v23 }
 0x488   : > { %2334 = vrot.lane.b32.xlu1 %v2333_v28, %s2470_s30  ;;  %v2338_v12 = vpack.i.bf16 %v1447_v61, %v1452_v56  ;;  %v1448_v24 = vsel %vm669_vm0, %v1396_v63, %v1408_v25  ;;  %v1449_v8 = vsel %vm669_vm0, %v2302_v58, %v1409_v11  ;;  %v1387_v4 = vsel %vm868_vm13, %v2209_v22, %v2326_v46 }
 0x489   : > { %v2315_v5 = vpop.permute.xlu1 %2314  ;;  %v2343_v21 = vpack.i.bf16 %v1449_v8, %v1448_v24 }
 0x48a   : > { %2339 = vrot.lane.b32.xlu2 %v2338_v12, %s2470_s30  ;;  %v2317_v30 = vunpack.i.h.bf16 %v2315_v5  ;;  %v2316_v26 = vunpack.i.l.bf16 %v2315_v5 }
 0x48b   : > { %2344 = vrot.lane.b32.xlu0 %v2343_v21, %s2470_s30 }
 0x48c   : > { %v1374_v58 = vsel %vm850_vm12, %v2199_v20, %v2316_v26  ;;  %v1375_v31 = vsel %vm850_vm12, %v2316_v26, %v2317_v30  ;;  %v2330_v32 = vpop.permute.xlu0 %2329  ;;  %v1446_v55 = vsel %vm669_vm0, %v2317_v30, %v2327_v10 }
 0x48d   : > { %v2332_v37 = vunpack.i.h.bf16 %v2330_v32  ;;  %v2331_v34 = vunpack.i.l.bf16 %v2330_v32  ;;  %v1444_v39 = vsel %vm669_vm0, %v1374_v58, %v1387_v4  ;;  %v1445_v40 = vsel %vm669_vm0, %v1375_v31, %v1388_v18 }
 0x48e   : > { %v2348_v51 = vpack.i.bf16 %v1445_v40, %v1444_v39 }
 0x48f   : > { %v1363_v22 = vsel %vm782_vm5, %v2214_v38, %v2331_v34  ;;  %v1364_v9 = vsel %vm782_vm5, %v2331_v34, %v2332_v37  ;;  %v1443_v20 = vsel %vm669_vm0, %v1344_v29, %v2332_v37  ;;  %v1569_v38 = vld [vmem:[%s3252_s14] sm:$0x3] }
 0x490   : > { %2349 = vrot.lane.b32.xlu1 %v2348_v51, %s2470_s30  ;;  %v1441_v53 = vsel %vm669_vm0, %v2794_v42, %v1363_v22  ;;  %v1442_v57 = vsel %vm669_vm0, %v1343_v7, %v1364_v9 }
 0x491   : > { %v2353_v56 = vpack.i.bf16 %v1441_v53, %v1446_v55  ;;  %v2358_v63 = vpack.i.bf16 %v1443_v20, %v1442_v57  ;;  %v1453_v55 = vld [vmem:[%s3250_s12] sm:$0x3] }
 0x493   : > { %2354 = vrot.lane.b32.xlu2 %v2353_v56, %s2470_s30  ;;  %2359 = vrot.lane.b32.xlu0 %v2358_v63, %s2470_s30 }
 0x498   : > { %1564 = vperm.xlu1 %2246, %v1561_v33  }
 0x49b   : > { %1572 = vperm.xlu2 %2297, %v1569_v38  }
 0x4d5   : > { %v1493_v28 = vpop.permute.xlu2 %1492 }
 0x4de   : > { %v1495_v10 = vpop.permute.xlu0 %1494 }
 0x4df   : > { %v1505_v11 = vsel %vm818_vm4, %v1493_v28, %v1495_v10 }
 0x4e0   : > { %2129 = vmatpush.msk.msra.mxu1 %vm669_vm0, %v1505_v11 }
 0x4e4   : > { %v2340_v46 = vpop.permute.xlu2 %2339 }
 0x4e5   : > { %v2341_v24 = vunpack.i.l.bf16 %v2340_v46  ;;  %v2342_v29 = vunpack.i.h.bf16 %v2340_v46 }
 0x4ec   : > { %v1491_v25 = vpop.permute.xlu1 %1490 }
 0x4ed   : > { %v1504_v61 = vsel %vm818_vm4, %v1491_v25, %v1493_v28  ;;  %v2355_v58 = vpop.permute.xlu2 %2354 }
 0x4ee   : > { %2127 = vmatpush.msk.msra.mxu0 %vm669_vm0, %v1504_v61  ;;  %v2356_v34 = vunpack.i.l.bf16 %v2355_v58  ;;  %v2357_v9 = vunpack.i.h.bf16 %v2355_v58 }
 0x4f5   : > { %v1573_v11 = vpop.permute.xlu2 %1572 }
 0x4fa   : > { %v2335_v12 = vpop.permute.xlu1 %2334 }
 0x4fb   : > { %v2337_v8 = vunpack.i.h.bf16 %v2335_v12  ;;  %v2336_v5 = vunpack.i.l.bf16 %v2335_v12 }
 0x4fd   : > { %v2345_v21 = vpop.permute.xlu0 %2344  ;;  %v1502_v30 = vsel %vm818_vm4, %v2336_v5, %v2337_v8  ;;  %v1503_v26 = vsel %vm818_vm4, %v2337_v8, %v2341_v24 }
 0x4fe   : > { %v2347_v4 = vunpack.i.h.bf16 %v2345_v21  ;;  %v2346_v18 = vunpack.i.l.bf16 %v2345_v21  ;;  %1533 = vmatpush.msra.mxu0 %v1502_v30  ;;  %1553 = vmatpush.msra.mxu1 %v1503_v26 }
 0x500   : > { %v1500_v31 = vsel %vm818_vm4, %v2342_v29, %v2346_v18  ;;  %v1501_v32 = vsel %vm818_vm4, %v2346_v18, %v2347_v4 }
 0x501   : > { %1534 = vmatpush.msra.mxu0 %v1500_v31  ;;  %1554 = vmatpush.msra.mxu1 %v1501_v32 }
 0x502   : > { %v2350_v37 = vpop.permute.xlu1 %2349 }
 0x503   : > { %v2352_v39 = vunpack.i.h.bf16 %v2350_v37  ;;  %v2351_v40 = vunpack.i.l.bf16 %v2350_v37 }
 0x505   : > { %v2360_v51 = vpop.permute.xlu0 %2359  ;;  %v1498_v7 = vsel %vm818_vm4, %v2351_v40, %v2352_v39  ;;  %v1499_v22 = vsel %vm818_vm4, %v2352_v39, %v2356_v34 }
 0x506   : > { %v2362_v20 = vunpack.i.h.bf16 %v2360_v51  ;;  %v2361_v53 = vunpack.i.l.bf16 %v2360_v51  ;;  %1535 = vmatpush.msra.mxu0 %v1498_v7  ;;  %1555 = vmatpush.msra.mxu1 %v1499_v22 }
 0x508   : > { %v1496_v57 = vsel %vm818_vm4, %v2357_v9, %v2361_v53  ;;  %v1497_v56 = vsel %vm818_vm4, %v2361_v53, %v2362_v20 }
 0x509   : > { %1536 = vmatpush.msra.mxu0 %v1496_v57  ;;  %1556 = vmatpush.msra.mxu1 %v1497_v56 }
 0x50a   : > { %2128 = vmatmul.msk.f32.vlgmr.msra.gmra.mxu0 %vm1012_vm14, %v1453_v55  ;;  %2130 = vmatmul.msk.f32.vlgmr.msra.gmra.mxu1 %vm1012_vm14, %v1453_v55  ;;  %v1565_v63 = vpop.permute.xlu1 %1564 }
 0x50b   : > { %2139 = vmatpush.msk.msrb.mxu0 %vm669_vm0, %v2655_v43  ;;  %2141 = vmatpush.msk.msrb.mxu1 %vm669_vm0, %v2657_v44 }
 0x587   : > { %v1538_v33 = vpop.f32.mrf.mxu0  ;;  %v1558_v38 = vpop.f32.mrf.mxu1 }
 0x588   : > { %v1567_v28 = vmul.f32 %v1565_v63, %v1538_v33  ;;  %v1568_v10 = vmul.f32 %v1565_v63, %v1558_v38 }
 0x58a   : > { %v1575_v25 = vadd.f32 %v1573_v11, %v1567_v28  ;;  %v1576_v61 = vadd.f32 %v1573_v11, %v1568_v10 }
 0x58c   : > { %v1577_v46 = vsub.f32 0.0, %v1575_v25  ;;  %v1578_v12 = vsub.f32 0.0, %v1576_v61 }
 0x58e   : > { %v1579_v24 = vmul.f32 1.442695, %v1577_v46  ;;  %v1581_v8 = vmul.f32 1.442695, %v1578_v12 }
 0x590   : > { %2437 = vpow2.f32 %v1579_v24 }
 0x591   : > { %2439 = vpow2.f32 %v1581_v8 }
 0x596   : > { %v2438_v5 = vpop.eup %2437 }
 0x597   : > { %v2440_v21 = vpop.eup %2439  ;;  %v1583_v43 = vadd.f32 1.0, %v2438_v5 }
 0x598   : > { %v1584_v30 = vadd.f32 1.0, %v2440_v21 }
 0x599   : > { %2441 = vrcp.f32 %v1583_v43 }
 0x59a   : > { %2443 = vrcp.f32 %v1584_v30 }
 0x59f   : > { %v2442_v44 = vpop.eup %2441 }
 0x5a0   : > { %v2444_v26 = vpop.eup %2443  ;;  %v3094_v29 = vmul.f32 %v2442_v44, %v1575_v25  ;;  %v3126_v25 = vld [vmem:[%s3256_s18] sm:$0xff] }
 0x5a1   : > { %v1588_v4 = vmul.f32 %v2444_v26, %v1576_v61  ;;  %2140 = vmatmul.msk.f32.vlgmr.msrb.gmra.mxu0 %vm665_vm1, %v3126_v25  ;;  %2142 = vmatmul.msk.f32.vlgmr.msrb.gmra.mxu1 %vm665_vm1, %v3126_v25 }
 0x5a2   : > { %v1603_v18 = vrot.slane %v3094_v29, 6  ;;  %v1595_v58 = vmul.f32 %v3094_v29, %v2635_v13  ;;  %v1597_v40 = vmul.f32 %v3094_v29, %v2653_v41  ;;  %v1599_v9 = vmul.f32 %v3094_v29, %v2637_v14 }
 0x5a3   : > { %v1600_v31 = vmul.f32 %v1588_v4, %v2692_v62  ;;  %v2363_v32 = vpack.i.bf16 %v1588_v4, %v3094_v29  ;;  %v1604_v37 = vrot.slane %v1588_v4, 6  ;;  %v1596_v34 = vmul.f32 %v1588_v4, %v2672_v52 }
 0x5a4   : > { %v1598_v51 = vmul.f32 %v1588_v4, %v2678_v54  ;;  %v1650_v13 = vrot.slane %v1595_v58, 6  ;;  %v1663_v62 = vrot.slane %v1597_v40, 4  ;;  %v1591_v20 = vmul.f32 %v3094_v29, %v2701_v3 }
 0x5a5   : > { %1689 = vrot.lane.b32.xlu1 %v1600_v31, %s2478_s1  ;;  %2364 = vrot.lane.b32.xlu0 %v2363_v32, %s2475_s2  ;;  %v2368_v39 = vpack.i.bf16 %v1604_v37, %v1603_v18  ;;  %v1651_v7 = vrot.slane %v1596_v34, 6  ;;  %v1592_v53 = vmul.f32 %v1588_v4, %v2694_v0  ;;  %v1593_v54 = vmul.f32 %v3094_v29, %v2698_v1 }
 0x5a6   : > { %v1664_v22 = vrot.slane %v1598_v51, 4  ;;  %v1594_v55 = vmul.f32 %v1588_v4, %v2687_v59  ;;  %v1674_v14 = vrot.slane %v3094_v29, 2  ;;  %v1675_v57 = vrot.slane %v1588_v4, 2 }
 0x5a7   : > { %2369 = vrot.lane.b32.xlu2 %v2368_v39, %s2473_s5  ;;  %v2378_v52 = vpack.i.bf16 %v1651_v7, %v1650_v13  ;;  %v1616_v56 = vrot.slane %v1591_v20, 4  ;;  %v1617_v63 = vrot.slane %v1592_v53, 4  ;;  %v1629_v3 = vrot.slane %v1593_v54, 2  ;;  %s2154_s5 = sshll.u32 %s3278_s25, 4 }
 0x5a8   : > { %v2383_v41 = vpack.i.bf16 %v1664_v22, %v1663_v62  ;;  %v1630_v33 = vrot.slane %v1594_v55, 2  ;;  %v2373_v0 = vpack.i.bf16 %v1675_v57, %v1674_v14  ;;  %v1590_v26 = vmul.f32 %v1588_v4, %v2729_v23 }
 0x5a9   : > { %v2388_v38 = vpack.i.bf16 %v1617_v63, %v1616_v56  ;;  %v1589_v51 = vmul.f32 %v3094_v29, %v2780_v16 }
 0x5aa   : > { %v2393_v28 = vpack.i.bf16 %v1630_v33, %v1629_v3 }
 0x5ad   : > { %1687 = vrot.lane.b32.xlu0 %v1599_v9, %s2478_s1  ;;  %2379 = vrot.lane.b32.xlu1 %v2378_v52, %s2479_s24  ;;  %s3275_s1 = sld [smem:[#allocation9_spill]] }
 0x5af   : > { %2384 = vrot.lane.b32.xlu2 %v2383_v41, %s2480_s26 }
 0x5b3   : > { %s656_s24 = scalar_lea.vmem %s3275_s1, %s2154_s5 }
 0x5b5   : > { %2374 = vrot.lane.b32.xlu0 %v2373_v0, %s2477_s23  ;;  %2389 = vrot.lane.b32.xlu1 %v2388_v38, %s2481_s27  ;;  %s2483_s27 = smov 124  }
 0x5b7   : > { %2394 = vrot.lane.b32.xlu2 %v2393_v28, %s2482_s3 }
 0x601   : > { %v2370_v1 = vpop.permute.xlu2 %2369 }
 0x602   : > { %v2371_v46 = vunpack.i.l.bf16 %v2370_v1  ;;  %v2372_v8 = vunpack.i.h.bf16 %v2370_v1 }
 0x604   : > { %v1609_v18 = vsel %vm782_vm5, %v2255_v6, %v2371_v46  ;;  %v1610_v39 = vsel %vm782_vm5, %v2371_v46, %v2372_v8  ;;  %v1695_v40 = vsel %vm1210_vm15, %v1590_v26, %v2372_v8  ;;  %v2029_v46 = vld [vmem:[%s3258_s20] sm:$0xff] }
 0x605   : > { %v1693_v6 = vsel %vm1210_vm15, %v2794_v42, %v1609_v18  ;;  %v1694_v7 = vsel %vm1210_vm15, %v1589_v51, %v1610_v39  ;;  %v1711_v39 = vld [vmem:[%s3253_s15] sm:$0xf] }
 0x609   : > { %v2385_v59 = vpop.permute.xlu2 %2384 }
 0x60a   : > { %v2387_v58 = vunpack.i.h.bf16 %v2385_v59  ;;  %v2386_v31 = vunpack.i.l.bf16 %v2385_v59 }
 0x60c   : > { %v1670_v62 = vsel %vm909_vm11, %v2387_v58, %v2886_v36  ;;  %v1669_v22 = vsel %vm909_vm11, %v2386_v31, %v2387_v58 }
 0x611   : > { %v2395_v5 = vpop.permute.xlu2 %2394 }
 0x612   : > { %v2396_v32 = vunpack.i.l.bf16 %v2395_v5  ;;  %v2397_v23 = vunpack.i.h.bf16 %v2395_v5 }
 0x614   : > { %v1635_v16 = vsel %vm868_vm13, %v2280_v2, %v2396_v32  ;;  %v1636_v41 = vsel %vm868_vm13, %v2396_v32, %v2397_v23 }
 0x617   : > { %v1690_v10 = vpop.permute.xlu1 %1689  ;;  %v2365_v11 = vpop.permute.xlu0 %2364 }
 0x618   : > { %v1692_v61 = vsel %vm936_vm8, %v1690_v10, %v2735_v27  ;;  %v2367_v27 = vunpack.i.h.bf16 %v2365_v11  ;;  %v2366_v44 = vunpack.i.l.bf16 %v2365_v11  ;;  %v1801_v11 = vld [vmem:[%s3255_s17] sm:$0xf] }
 0x619   : > { %1734 = vrot.lane.b32.xlu2 %v1692_v61, %s2470_s30  ;;  %v2021_v61 = vld [vmem:[%s3257_s19] sm:$0xff] }
 0x61a   : > { %v1644_v15 = vsel %vm755_vm9, %v2366_v44, %v2367_v27 }
 0x61f   : > { %v1688_v12 = vpop.permute.xlu0 %1687  ;;  %v2380_v24 = vpop.permute.xlu1 %2379 }
 0x620   : > { %v2382_v21 = vunpack.i.h.bf16 %v2380_v24  ;;  %v2381_v43 = vunpack.i.l.bf16 %v2380_v24  ;;  %1730 = vrot.lane.b32.xlu0 %v1688_v12, %s2470_s30  ;;  %v1691_v30 = vsel %vm936_vm8, %v1688_v12, %v1690_v10  ;;  %v1793_v10 = vld [vmem:[%s3254_s16] sm:$0xf] }
 0x621   : > { %1732 = vrot.lane.b32.xlu1 %v1691_v30, %s2470_s30 }
 0x622   : > { %v1657_v37 = vsel %vm894_vm10, %v2382_v21, %v2891_v48  ;;  %v1656_v34 = vsel %vm894_vm10, %v2381_v43, %v2382_v21  ;;  %v1702_v13 = vsel %vm1210_vm15, %v2366_v44, %v2381_v43 }
 0x623   : > { %v1704_v4 = vsel %vm1210_vm15, %v2367_v27, %v1657_v37  ;;  %v1703_v48 = vsel %vm1210_vm15, %v1644_v15, %v1656_v34  ;;  %v1705_v54 = vsel %vm669_vm0, %v1702_v13, %v2386_v31 }
 0x624   : > { %v1706_v55 = vsel %vm669_vm0, %v1703_v48, %v1669_v22  ;;  %v1707_v36 = vsel %vm669_vm0, %v1704_v4, %v1670_v62 }
 0x627   : > { %v2375_v29 = vpop.permute.xlu0 %2374  ;;  %v2390_v9 = vpop.permute.xlu1 %2389 }
 0x628   : > { %v2377_v42 = vunpack.i.h.bf16 %v2375_v29  ;;  %v2376_v52 = vunpack.i.l.bf16 %v2375_v29  ;;  %v2392_v20 = vunpack.i.h.bf16 %v2390_v9  ;;  %v2391_v53 = vunpack.i.l.bf16 %v2390_v9 }
 0x62a   : > { %v1681_v14 = vsel %vm921_vm7, %v2377_v42, %v2893_v49  ;;  %v1680_v60 = vsel %vm921_vm7, %v2376_v52, %v2377_v42  ;;  %v1698_v2 = vsel %vm669_vm0, %v1695_v40, %v2392_v20  ;;  %v1622_v57 = vsel %vm850_vm12, %v2275_v50, %v2391_v53 }
 0x62b   : > { %v1623_v56 = vsel %vm850_vm12, %v2391_v53, %v2392_v20  ;;  %v1708_v63 = vsel %vm1217_vm2, %v1705_v54, %v2376_v52  ;;  %v1709_v3 = vsel %vm1217_vm2, %v1706_v55, %v1680_v60  ;;  %v1696_v33 = vsel %vm669_vm0, %v1693_v6, %v1622_v57 }
 0x62c   : > { %v2398_v0 = vpack.i.bf16 %v1709_v3, %v1708_v63  ;;  %v1699_v38 = vsel %vm1217_vm2, %v1696_v33, %v1635_v16  ;;  %v1710_v49 = vsel %vm1217_vm2, %v1707_v36, %v1681_v14  ;;  %v1697_v28 = vsel %vm669_vm0, %v1694_v7, %v1623_v56  ;;  %v1896_v56 = vpop.f32.mrf.mxu0  ;;  %v1916_v63 = vpop.f32.mrf.mxu1 }
 0x62d   : > { %v2403_v1 = vpack.i.bf16 %v1699_v38, %v1710_v49  ;;  %v1700_v35 = vsel %vm1217_vm2, %v1697_v28, %v1636_v41  ;;  %v1701_v50 = vsel %vm1217_vm2, %v1698_v2, %v2397_v23 }
 0x62e   : > { %2399 = vrot.lane.b32.xlu0 %v2398_v0, %s2470_s30  ;;  %v2408_v59 = vpack.i.bf16 %v1701_v50, %v1700_v35 }
 0x62f   : > { %2404 = vrot.lane.b32.xlu1 %v2403_v1, %s2470_s30 }
 0x630   : > { %2409 = vrot.lane.b32.xlu2 %v2408_v59, %s2470_s30  ;;  %s2485_s30 = smov 116  }
 0x636   : > { %1796 = vperm.xlu0 %2180, %v1793_v10  }
 0x637   : > { %1804 = vperm.xlu1 %2246, %v1801_v11  }
 0x638   : > { %1825 = vrot.lane.b32.xlu2 %v3126_v25, %s2483_s27 }
 0x63e   : > { %1919 = vrot.lane.b32.xlu0 %v3126_v25, %s2484_s29 }
 0x63f   : > { %1969 = vrot.lane.b32.xlu1 %v3126_v25, %s2485_s30 }
 0x640   : > { %2024 = vperm.xlu2 %2297, %v2021_v61  }
 0x646   : > { %2032 = vperm.xlu0 %2180, %v2029_v46  }
 0x673   : > { %v1735_v24 = vpop.permute.xlu2 %1734 }
 0x68a   : > { %v2410_v43 = vpop.permute.xlu2 %2409 }
 0x68b   : > { %v2412_v26 = vunpack.i.h.bf16 %v2410_v43  ;;  %v2411_v18 = vunpack.i.l.bf16 %v2410_v43 }
 0x68d   : > { %v1737_v40 = vsel %vm818_vm4, %v2411_v18, %v2412_v26 }
 0x692   : > { %v1731_v12 = vpop.permute.xlu0 %1730  ;;  %v1826_v23 = vpop.permute.xlu2 %1825 }
 0x693   : > { %v1733_v8 = vpop.permute.xlu1 %1732 }
 0x694   : > { %v1740_v5 = vsel %vm818_vm4, %v1731_v12, %v1733_v8  ;;  %v1741_v21 = vsel %vm818_vm4, %v1733_v8, %v1735_v24 }
 0x695   : > { %2131 = vmatpush.msk.msrb.mxu2 %vm1210_vm15, %v1740_v5  ;;  %2133 = vmatpush.msk.msrb.mxu3 %vm1210_vm15, %v1741_v21 }
 0x69a   : > { %v2025_v35 = vpop.permute.xlu2 %2024 }
 0x6a0   : > { %v2400_v30 = vpop.permute.xlu0 %2399 }
 0x6a1   : > { %v2402_v25 = vunpack.i.h.bf16 %v2400_v30  ;;  %v2401_v27 = vunpack.i.l.bf16 %v2400_v30  ;;  %v2405_v44 = vpop.permute.xlu1 %2404 }
 0x6a2   : > { %v2407_v58 = vunpack.i.h.bf16 %v2405_v44  ;;  %v2406_v31 = vunpack.i.l.bf16 %v2405_v44 }
 0x6a3   : > { %v1738_v32 = vsel %vm818_vm4, %v2401_v27, %v2402_v25 }
 0x6a4   : > { %1767 = vmatpush.msrb.mxu2 %v1738_v32  ;;  %v1739_v37 = vsel %vm818_vm4, %v2402_v25, %v2406_v31  ;;  %v1736_v34 = vsel %vm818_vm4, %v2407_v58, %v2411_v18 }
 0x6a5   : > { %1787 = vmatpush.msrb.mxu3 %v1739_v37 }
 0x6a6   : > { %1768 = vmatpush.msrb.mxu2 %v1736_v34 }
 0x6a7   : > { %2132 = vmatmul.msk.f32.vlgmr.msrb.gmra.mxu2 %vm1265_vm3, %v1711_v39  ;;  %1788 = vmatpush.msrb.mxu3 %v1737_v40 }
 0x6a8   : > { %2135 = vmatpush.msk.msra.mxu2 %vm669_vm0, %v2660_v45  ;;  %2134 = vmatmul.msk.f32.vlgmr.msrb.gmra.mxu3 %vm1265_vm3, %v1711_v39  ;;  %v1797_v51 = vpop.permute.xlu0 %1796 }
 0x6a9   : > { %2137 = vmatpush.msk.msra.mxu3 %vm669_vm0, %v2663_v47  ;;  %v1805_v4 = vpop.permute.xlu1 %1804 }
 0x6aa   : > { %2143 = vmatpush.msk.msrb.mxu2 %vm669_vm0, %v2978_v17 }
 0x6ab   : > { %2145 = vmatpush.msk.msrb.mxu3 %vm669_vm0, %v2981_v19 }
 0x6af   : > { %2136 = vmatmul.msk.f32.vlgmr.msra.gmra.mxu2 %vm665_vm1, %v1826_v23 }
 0x6b0   : > { %2138 = vmatmul.msk.f32.vlgmr.msra.gmra.mxu3 %vm665_vm1, %v1826_v23  ;;  %v1920_v15 = vpop.permute.xlu0 %1919 }
 0x6b1   : > { %v1970_v14 = vpop.permute.xlu1 %1969 }
 0x6b7   : > { %2144 = vmatmul.msk.f32.vlgmr.msrb.gmra.mxu2 %vm665_vm1, %v1920_v15 }
 0x6b8   : > { %2146 = vmatmul.msk.f32.vlgmr.msrb.gmra.mxu3 %vm665_vm1, %v1920_v15  ;;  %v2033_v10 = vpop.permute.xlu0 %2032 }
 0x72a   : > { %v1770_v45 = vpop.f32.mrf.mxu2 }
 0x72b   : > { %v1799_v6 = vmul.f32 %v1797_v51, %v1770_v45  ;;  %v1790_v47 = vpop.f32.mrf.mxu3 }
 0x72c   : > { %v1800_v13 = vmul.f32 %v1797_v51, %v1790_v47 }
 0x72d   : > { %v1807_v48 = vadd.f32 %v1805_v4, %v1799_v6 }
 0x72e   : > { %v1808_v7 = vadd.f32 %v1805_v4, %v1800_v13 }
 0x72f   : > { %v1809_v62 = vsub.f32 0.0, %v1807_v48 }
 0x730   : > { %v1810_v22 = vsub.f32 0.0, %v1808_v7 }
 0x731   : > { %v1811_v16 = vmul.f32 1.442695, %v1809_v62 }
 0x732   : > { %v1813_v29 = vmul.f32 1.442695, %v1810_v22  ;;  %v1850_v2 = vpop.f32.mrf.mxu2 }
 0x733   : > { %2445 = vpow2.f32 %v1811_v16  ;;  %v1870_v57 = vpop.f32.mrf.mxu3  ;;  %v1897_v3 = vadd.f32 %v1896_v56, %v1850_v2 }
 0x734   : > { %2447 = vpow2.f32 %v1813_v29  ;;  %v1917_v33 = vadd.f32 %v1916_v63, %v1870_v57 }
 0x739   : > { %v2446_v9 = vpop.eup %2445 }
 0x73a   : > { %v2448_v42 = vpop.eup %2447  ;;  %v1815_v52 = vadd.f32 1.0, %v2446_v9  ;;  %v1944_v0 = vpop.f32.mrf.mxu2 }
 0x73b   : > { %v1816_v20 = vadd.f32 1.0, %v2448_v42  ;;  %v1964_v38 = vpop.f32.mrf.mxu3 }
 0x73c   : > { %2449 = vrcp.f32 %v1815_v52  ;;  %v1968_v49 = vadd.f32 %v1964_v38, %v1917_v33 }
 0x73d   : > { %2451 = vrcp.f32 %v1816_v20 }
 0x742   : > { %v2450_v53 = vpop.eup %2449 }
 0x743   : > { %v2452_v41 = vpop.eup %2451  ;;  %v1819_v54 = vmul.f32 %v2450_v53, %v1807_v48 }
 0x744   : > { %v1820_v55 = vmul.f32 %v2452_v41, %v1808_v7 }
 0x745   : > { %v1821_v36 = vadd.f32 %v1819_v54, %v2978_v17  ;;  %v1967_v17 = vadd.f32 %v1944_v0, %v1897_v3 }
 0x746   : > { %v1822_v60 = vadd.f32 %v1820_v55, %v2981_v19 }
 0x747   : > { %2147 = vmatpush.msk.msra.mxu0 %vm669_vm0, %v1821_v36 }
 0x748   : > { %2148 = vmatmul.msk.f32.vlgmr.msra.gmra.mxu0 %vm665_vm1, %v1970_v14  ;;  %2149 = vmatpush.msk.msra.mxu1 %vm669_vm0, %v1822_v60 }
 0x749   : > { %2150 = vmatmul.msk.f32.vlgmr.msra.gmra.mxu1 %vm665_vm1, %v1970_v14 }
 0x7c5   : > { %v1996_v28 = vpop.f32.mrf.mxu0 }
 0x7c6   : > { %v2019_v19 = vadd.f32 %v1996_v28, %v1967_v17  ;;  %v2016_v1 = vpop.f32.mrf.mxu1 }
 0x7c7   : > { %v2020_v50 = vadd.f32 %v2016_v1, %v1968_v49 }
 0x7c8   : > { %v2027_v59 = vmul.f32 %v2025_v35, %v2019_v19 }
 0x7c9   : > { %v2028_v11 = vmul.f32 %v2025_v35, %v2020_v50 }
 0x7ca   : > { %v2035_v61 = vadd.f32 %v2033_v10, %v2027_v59 }
 0x7cb   : > { %v2036_v46 = vadd.f32 %v2033_v10, %v2028_v11 }
 0x7cc   : > { %v2037_v12 = vsub.f32 0.0, %v2035_v61 }
 0x7cd   : > { %v2038_v24 = vsub.f32 0.0, %v2036_v46 }
 0x7ce   : > { %v2039_v8 = vmul.f32 1.442695, %v2037_v12 }
 0x7cf   : > { %v2041_v5 = vmul.f32 1.442695, %v2038_v24 }
 0x7d0   : > { %2453 = vpow2.f32 %v2039_v8 }
 0x7d1   : > { %2455 = vpow2.f32 %v2041_v5 }
 0x7d6   : > { %v2454_v21 = vpop.eup %2453 }
 0x7d7   : > { %v2456_v43 = vpop.eup %2455  ;;  %v2043_v30 = vadd.f32 1.0, %v2454_v21 }
 0x7d8   : > { %v2044_v25 = vadd.f32 1.0, %v2456_v43 }
 0x7d9   : > { %2457 = vrcp.f32 %v2043_v30 }
 0x7da   : > { %2459 = vrcp.f32 %v2044_v25 }
 0x7df   : > { %v2458_v27 = vpop.eup %2457 }
 0x7e0   : > { %v2460_v44 = vpop.eup %2459  ;;  %v2047_v26 = vmul.f32 %v2458_v27, %v2035_v61 }
 0x7e1   : > { %v2048_v18 = vmul.f32 %v2460_v44, %v2036_v46 }
 0x7e2   : > { %2049 = vst [vmem:[%s656_s24] sm:$0xff] %v2047_v26 }
 0x7e3   : > { %2050 = vst [vmem:[%s656_s24 + $0x8] sm:$0xff] %v2048_v18 }
 0x7e4 PF: > { %s3276_s26 = sld [smem:[#allocation2_spill]] }
 0x7ea   : > { %s31_s2 = sadd.s32 1, %s3276_s26  }
 0x7eb   : > { %p28_p4 = scmp.ge.s32.totalorder %s31_s2, 4  }
 0x7ed   :  { %30 = sbr.rel (!%p28_p4) target bundleno = 8 (0x8), region = 134 }

</bundles_post_ra>
